<compile_context>
chip_gen: v7x
topology: tpu7x:2x2x1
jax: 0.10.0
libtpu: 0.0.40
codegen_flags: <defaults>
</compile_context>

<pallas_src>
import jax
import jax.numpy as jnp
from jax import lax
from jax.experimental import pallas as pl
from jax.experimental.pallas import tpu as pltpu

OUT_PAD = 128  # lane-dense padded class dimension (real classes sliced out in wrapper)


def _classifier_kernel(prem_ids_ref, hypo_ids_ref,        # (B_TILE, S) int32 VMEM tiles
                       emb_ref,                            # (V_PAD, E) VMEM-resident embedding
                       w1_ref, b1_ref, w2_ref, b2_ref,     # resident MLP weights (VMEM)
                       out_ref,                            # (B_TILE, OUT_PAD)
                       comb_ref):                          # (B_TILE, 4E) scratch for the fused dot
    b_tile, seq = prem_ids_ref.shape
    v_pad, e = emb_ref.shape

    emb = emb_ref[...]                                                     # (V_PAD, E)
    viota = lax.broadcasted_iota(jnp.int32, (b_tile, v_pad), 1)            # (B_TILE, V_PAD)
    valid = (viota != 0).astype(jnp.float32)                               # pad token (id 0) column zeroed

    def masked_mean(ids):
        # counts[b, v] = #{s : ids[b, s] == v}, with the pad column (v == 0) zeroed.
        counts = jnp.zeros((b_tile, v_pad), jnp.float32)
        for s in range(seq):                                               # static, small S
            counts = counts + (ids[:, s:s + 1] == viota).astype(jnp.float32)
        counts = counts * valid
        length = jnp.sum(counts, axis=-1, keepdims=True)                   # (B_TILE, 1)
        summed = jnp.dot(counts, emb, preferred_element_type=jnp.float32)  # (B_TILE, E) on the MXU
        return summed / jnp.maximum(length, 1e-9)

    u = masked_mean(prem_ids_ref[...])
    v = masked_mean(hypo_ids_ref[...])

    # combined = [u, v, |u-v|, u*v]: written into a (B_TILE, 4E) scratch so the first
    # MLP layer is a single K=4E dot (fills the 256-wide MXU on v6e/v7x).
    comb_ref[:, 0:e] = u
    comb_ref[:, e:2 * e] = v
    comb_ref[:, 2 * e:3 * e] = jnp.abs(u - v)
    comb_ref[:, 3 * e:4 * e] = u * v

    h = jnp.dot(comb_ref[...], w1_ref[...], preferred_element_type=jnp.float32)
    h = jnp.maximum(h + b1_ref[...], 0.0)                                  # ReLU
    out_ref[...] = (jnp.dot(h, w2_ref[...], preferred_element_type=jnp.float32)
                    + b2_ref[...])


def baseline_classifier(premise_ids, hypothesis_ids, embedding_matrix,
                        w1, b1, w2, b2, *, b_tile=None):
    """premise_ids / hypothesis_ids: int32 [B, S]; returns logits [B, num_classes].

    (prem_len / hypo_len of the torch forward are unused there -- lengths are derived
    from the pad mask -- so they are not kernel inputs.)
    """
    premise_ids = premise_ids.astype(jnp.int32)
    hypothesis_ids = hypothesis_ids.astype(jnp.int32)

    B, S = premise_ids.shape
    V, E = embedding_matrix.shape
    H = w1.shape[1]
    C = w2.shape[1]
    assert w1.shape[0] == 4 * E
    b1 = b1.reshape(1, H)
    b2 = b2.reshape(1, C)

    if b_tile is None:
        if B >= 512 and B % 256 == 0:
            b_tile = 256          # fills the 256-row MXU on v6e/v7x, grid still >= 2
        elif B % 128 == 0:
            b_tile = 128          # >= 2 grid steps keep both v7x TensorCores busy
        else:
            b_tile = B            # small / demo batches: single tile
    assert B % b_tile == 0, "batch must be divisible by the batch tile"

    # Pad vocab to a lane-friendly multiple of 128 (zero rows contribute nothing);
    # pad the tiny class dim up to 128 lanes for unmasked vector stores.
    V_PAD = ((V + 127) // 128) * 128
    emb_p = jnp.pad(embedding_matrix.astype(jnp.float32), ((0, V_PAD - V), (0, 0)))
    w2_p = jnp.pad(w2, ((0, 0), (0, OUT_PAD - C)))
    b2_p = jnp.pad(b2, ((0, 0), (0, OUT_PAD - C)))

    grid = (B // b_tile,)

    # rough VMEM budget: resident params (x2 slack) + double-buffered id/output tiles + scratch
    vmem_bytes = 4 * (2 * (V_PAD * E + 4 * E * H + H + H * OUT_PAD + OUT_PAD)
                      + 2 * 2 * b_tile * S
                      + 2 * b_tile * OUT_PAD
                      + b_tile * 4 * E)
    vmem_bytes = int(min(max(vmem_bytes + (4 << 20), 16 << 20), 48 << 20))  # under v7x's 64 MiB

    out = pl.pallas_call(
        _classifier_kernel,
        out_shape=jax.ShapeDtypeStruct((B, OUT_PAD), jnp.float32),
        grid_spec=pltpu.PrefetchScalarGridSpec(
            num_scalar_prefetch=0,
            grid=grid,
            in_specs=[
                pl.BlockSpec((b_tile, S), lambda i: (i, 0)),        # premise ids
                pl.BlockSpec((b_tile, S), lambda i: (i, 0)),        # hypothesis ids
                pl.BlockSpec((V_PAD, E), lambda i: (0, 0)),         # embedding table, resident
                pl.BlockSpec((4 * E, H), lambda i: (0, 0)),         # w1, resident
                pl.BlockSpec((1, H), lambda i: (0, 0)),             # b1, resident
                pl.BlockSpec((H, OUT_PAD), lambda i: (0, 0)),       # w2 (padded), resident
                pl.BlockSpec((1, OUT_PAD), lambda i: (0, 0)),       # b2 (padded), resident
            ],
            out_specs=pl.BlockSpec((b_tile, OUT_PAD), lambda i: (i, 0)),
            scratch_shapes=[
                pltpu.VMEM((b_tile, 4 * E), jnp.float32),           # [u, v, |u-v|, u*v] staging
            ]),
        compiler_params=pltpu.CompilerParams(
            dimension_semantics=("parallel",),
            vmem_limit_bytes=vmem_bytes),
    )(premise_ids, hypothesis_ids, emb_p, w1, b1, w2_p, b2_p)

    return out[:, :C]


if __name__ == "__main__":
    # small shapes: batch=8, seq=8, embedding_dim=128, hidden=512, classes=3
    B, S, E, H, C = 8, 8, 128, 512, 3
    VOCAB = 50

    key = jax.random.PRNGKey(0)
    k_emb, k_p, k_h, k_w1, k_b1, k_w2, k_b2 = jax.random.split(key, 7)

    embedding_matrix = jax.random.normal(k_emb, (VOCAB, E), dtype=jnp.float32)
    embedding_matrix = embedding_matrix.at[0].set(0.0)   # pad row (masked out anyway)

    premise_ids = jax.random.randint(k_p, (B, S), 0, VOCAB, dtype=jnp.int32)
    hypothesis_ids = jax.random.randint(k_h, (B, S), 0, VOCAB, dtype=jnp.int32)

    # MLP params stored as [in, out] (transpose of nn.Linear.weight)
    w1 = jax.random.normal(k_w1, (4 * E, H), dtype=jnp.float32) * 0.02
    b1 = jax.random.normal(k_b1, (1, H), dtype=jnp.float32) * 0.02
    w2 = jax.random.normal(k_w2, (H, C), dtype=jnp.float32) * 0.02
    b2 = jax.random.normal(k_b2, (1, C), dtype=jnp.float32) * 0.02

    logits = baseline_classifier(premise_ids, hypothesis_ids,
                                 embedding_matrix, w1, b1, w2, b2)
    jax.block_until_ready(logits)

    # pure-JAX reference check
    def avg(ids):
        emb = embedding_matrix[ids]
        m = (ids != 0).astype(jnp.float32)[..., None]
        return jnp.sum(emb * m, axis=1) / jnp.maximum(jnp.sum(m, axis=1), 1e-9)

    u, v = avg(premise_ids), avg(hypothesis_ids)
    comb = jnp.concatenate([u, v, jnp.abs(u - v), u * v], axis=1)
    expected = jnp.maximum(comb @ w1 + b1, 0.0) @ w2 + b2

    assert logits.shape == (B, C)
    assert jnp.allclose(logits, expected, atol=1e-4, rtol=1e-4), (
        float(jnp.max(jnp.abs(logits - expected))))

    print("KERNEL_OK")
</pallas_src>

<mosaic_0001>
module attributes {stable_mosaic.version = 11 : i64} {
  func.func @_classifier_kernel(%arg0: i32, %arg1: memref<8x8xi32, #tpu.memory_space<vmem>>, %arg2: memref<8x8xi32, #tpu.memory_space<vmem>>, %arg3: memref<128x128xf32, #tpu.memory_space<vmem>>, %arg4: memref<512x512xf32, #tpu.memory_space<vmem>>, %arg5: memref<1x512xf32, #tpu.memory_space<vmem>>, %arg6: memref<512x128xf32, #tpu.memory_space<vmem>>, %arg7: memref<1x128xf32, #tpu.memory_space<vmem>>, %arg8: memref<8x128xf32, #tpu.memory_space<vmem>>, %arg9: memref<8x512xf32, #tpu.memory_space<vmem>>) attributes {dimension_semantics = [#tpu.dimension_semantics<parallel>], iteration_bounds = array<i64: 1>, scalar_prefetch = 0 : i64, scratch_operands = 1 : i64, tpu.core_type = #tpu.core_type<tc>, window_params = [{transform_indices = @transform_0, window_bounds = array<i64: 8, 8>}, {transform_indices = @transform_1, window_bounds = array<i64: 8, 8>}, {pipeline_mode = #tpu.pipeline_mode<synchronous>, transform_indices = @transform_2, window_bounds = array<i64: 128, 128>}, {pipeline_mode = #tpu.pipeline_mode<synchronous>, transform_indices = @transform_3, window_bounds = array<i64: 512, 512>}, {pipeline_mode = #tpu.pipeline_mode<synchronous>, transform_indices = @transform_4, window_bounds = array<i64: 1, 512>}, {pipeline_mode = #tpu.pipeline_mode<synchronous>, transform_indices = @transform_5, window_bounds = array<i64: 512, 128>}, {pipeline_mode = #tpu.pipeline_mode<synchronous>, transform_indices = @transform_6, window_bounds = array<i64: 1, 128>}, {transform_indices = @transform_7, window_bounds = array<i64: 8, 128>}]} {
    %c0 = arith.constant 0 : index
    %c0_0 = arith.constant 0 : index
    %0 = vector.load %arg3[%c0, %c0_0] : memref<128x128xf32, #tpu.memory_space<vmem>>, vector<128x128xf32>
    %1 = tpu.iota {dimensions = array<i32: 1>} : vector<8x128xi32>
    %c0_i32 = arith.constant 0 : i32
    %2 = vector.broadcast %c0_i32 : i32 to vector<8x128xi32>
    %3 = arith.cmpi ne, %1, %2 : vector<8x128xi32>
    %4 = arith.extui %3 : vector<8x128xi1> to vector<8x128xi32>
    %5 = arith.sitofp %4 : vector<8x128xi32> to vector<8x128xf32>
    %c0_1 = arith.constant 0 : index
    %c0_2 = arith.constant 0 : index
    %6 = vector.load %arg1[%c0_1, %c0_2] : memref<8x8xi32, #tpu.memory_space<vmem>>, vector<8x8xi32>
    %cst = arith.constant 0.000000e+00 : f32
    %7 = vector.broadcast %cst : f32 to vector<8x128xf32>
    %8 = vector.extract_strided_slice %6 {offsets = [0, 0], sizes = [8, 1], strides = [1, 1]} : vector<8x8xi32> to vector<8x1xi32>
    %9 = vector.broadcast %8 : vector<8x1xi32> to vector<8x128xi32>
    %10 = arith.cmpi eq, %9, %1 : vector<8x128xi32>
    %11 = arith.extui %10 : vector<8x128xi1> to vector<8x128xi32>
    %12 = arith.sitofp %11 : vector<8x128xi32> to vector<8x128xf32>
    %13 = arith.addf %7, %12 : vector<8x128xf32>
    %14 = vector.extract_strided_slice %6 {offsets = [0, 1], sizes = [8, 1], strides = [1, 1]} : vector<8x8xi32> to vector<8x1xi32>
    %15 = vector.broadcast %14 : vector<8x1xi32> to vector<8x128xi32>
    %16 = arith.cmpi eq, %15, %1 : vector<8x128xi32>
    %17 = arith.extui %16 : vector<8x128xi1> to vector<8x128xi32>
    %18 = arith.sitofp %17 : vector<8x128xi32> to vector<8x128xf32>
    %19 = arith.addf %13, %18 : vector<8x128xf32>
    %20 = vector.extract_strided_slice %6 {offsets = [0, 2], sizes = [8, 1], strides = [1, 1]} : vector<8x8xi32> to vector<8x1xi32>
    %21 = vector.broadcast %20 : vector<8x1xi32> to vector<8x128xi32>
    %22 = arith.cmpi eq, %21, %1 : vector<8x128xi32>
    %23 = arith.extui %22 : vector<8x128xi1> to vector<8x128xi32>
    %24 = arith.sitofp %23 : vector<8x128xi32> to vector<8x128xf32>
    %25 = arith.addf %19, %24 : vector<8x128xf32>
    %26 = vector.extract_strided_slice %6 {offsets = [0, 3], sizes = [8, 1], strides = [1, 1]} : vector<8x8xi32> to vector<8x1xi32>
    %27 = vector.broadcast %26 : vector<8x1xi32> to vector<8x128xi32>
    %28 = arith.cmpi eq, %27, %1 : vector<8x128xi32>
    %29 = arith.extui %28 : vector<8x128xi1> to vector<8x128xi32>
    %30 = arith.sitofp %29 : vector<8x128xi32> to vector<8x128xf32>
    %31 = arith.addf %25, %30 : vector<8x128xf32>
    %32 = vector.extract_strided_slice %6 {offsets = [0, 4], sizes = [8, 1], strides = [1, 1]} : vector<8x8xi32> to vector<8x1xi32>
    %33 = vector.broadcast %32 : vector<8x1xi32> to vector<8x128xi32>
    %34 = arith.cmpi eq, %33, %1 : vector<8x128xi32>
    %35 = arith.extui %34 : vector<8x128xi1> to vector<8x128xi32>
    %36 = arith.sitofp %35 : vector<8x128xi32> to vector<8x128xf32>
    %37 = arith.addf %31, %36 : vector<8x128xf32>
    %38 = vector.extract_strided_slice %6 {offsets = [0, 5], sizes = [8, 1], strides = [1, 1]} : vector<8x8xi32> to vector<8x1xi32>
    %39 = vector.broadcast %38 : vector<8x1xi32> to vector<8x128xi32>
    %40 = arith.cmpi eq, %39, %1 : vector<8x128xi32>
    %41 = arith.extui %40 : vector<8x128xi1> to vector<8x128xi32>
    %42 = arith.sitofp %41 : vector<8x128xi32> to vector<8x128xf32>
    %43 = arith.addf %37, %42 : vector<8x128xf32>
    %44 = vector.extract_strided_slice %6 {offsets = [0, 6], sizes = [8, 1], strides = [1, 1]} : vector<8x8xi32> to vector<8x1xi32>
    %45 = vector.broadcast %44 : vector<8x1xi32> to vector<8x128xi32>
    %46 = arith.cmpi eq, %45, %1 : vector<8x128xi32>
    %47 = arith.extui %46 : vector<8x128xi1> to vector<8x128xi32>
    %48 = arith.sitofp %47 : vector<8x128xi32> to vector<8x128xf32>
    %49 = arith.addf %43, %48 : vector<8x128xf32>
    %50 = vector.extract_strided_slice %6 {offsets = [0, 7], sizes = [8, 1], strides = [1, 1]} : vector<8x8xi32> to vector<8x1xi32>
    %51 = vector.broadcast %50 : vector<8x1xi32> to vector<8x128xi32>
    %52 = arith.cmpi eq, %51, %1 : vector<8x128xi32>
    %53 = arith.extui %52 : vector<8x128xi1> to vector<8x128xi32>
    %54 = arith.sitofp %53 : vector<8x128xi32> to vector<8x128xf32>
    %55 = arith.addf %49, %54 : vector<8x128xf32>
    %56 = arith.mulf %55, %5 : vector<8x128xf32>
    %cst_3 = arith.constant dense<0.000000e+00> : vector<8xf32>
    %57 = vector.multi_reduction <add>, %56, %cst_3 [1] : vector<8x128xf32> to vector<8xf32>
    %58 = vector.shape_cast %57 : vector<8xf32> to vector<8x1xf32>
    %cst_4 = arith.constant dense<0.000000e+00> : vector<8x128xf32>
    %59 = tpu.matmul %56, %0, %cst_4 {dimension_numbers = #tpu.dot_dimension_numbers<[1], [0], [0], [1], [0, 0, 1, 1], [], []>} : vector<8x128xf32>, vector<128x128xf32>, vector<8x128xf32> -> vector<8x128xf32>
    %cst_5 = arith.constant 9.99999971E-10 : f32
    %60 = vector.broadcast %cst_5 : f32 to vector<8x1xf32>
    %61 = arith.maximumf %58, %60 : vector<8x1xf32>
    %62 = vector.broadcast %61 : vector<8x1xf32> to vector<8x128xf32>
    %63 = arith.divf %59, %62 : vector<8x128xf32>
    %c0_6 = arith.constant 0 : index
    %c0_7 = arith.constant 0 : index
    %64 = vector.load %arg2[%c0_6, %c0_7] : memref<8x8xi32, #tpu.memory_space<vmem>>, vector<8x8xi32>
    %cst_8 = arith.constant 0.000000e+00 : f32
    %65 = vector.broadcast %cst_8 : f32 to vector<8x128xf32>
    %66 = vector.extract_strided_slice %64 {offsets = [0, 0], sizes = [8, 1], strides = [1, 1]} : vector<8x8xi32> to vector<8x1xi32>
    %67 = vector.broadcast %66 : vector<8x1xi32> to vector<8x128xi32>
    %68 = arith.cmpi eq, %67, %1 : vector<8x128xi32>
    %69 = arith.extui %68 : vector<8x128xi1> to vector<8x128xi32>
    %70 = arith.sitofp %69 : vector<8x128xi32> to vector<8x128xf32>
    %71 = arith.addf %65, %70 : vector<8x128xf32>
    %72 = vector.extract_strided_slice %64 {offsets = [0, 1], sizes = [8, 1], strides = [1, 1]} : vector<8x8xi32> to vector<8x1xi32>
    %73 = vector.broadcast %72 : vector<8x1xi32> to vector<8x128xi32>
    %74 = arith.cmpi eq, %73, %1 : vector<8x128xi32>
    %75 = arith.extui %74 : vector<8x128xi1> to vector<8x128xi32>
    %76 = arith.sitofp %75 : vector<8x128xi32> to vector<8x128xf32>
    %77 = arith.addf %71, %76 : vector<8x128xf32>
    %78 = vector.extract_strided_slice %64 {offsets = [0, 2], sizes = [8, 1], strides = [1, 1]} : vector<8x8xi32> to vector<8x1xi32>
    %79 = vector.broadcast %78 : vector<8x1xi32> to vector<8x128xi32>
    %80 = arith.cmpi eq, %79, %1 : vector<8x128xi32>
    %81 = arith.extui %80 : vector<8x128xi1> to vector<8x128xi32>
    %82 = arith.sitofp %81 : vector<8x128xi32> to vector<8x128xf32>
    %83 = arith.addf %77, %82 : vector<8x128xf32>
    %84 = vector.extract_strided_slice %64 {offsets = [0, 3], sizes = [8, 1], strides = [1, 1]} : vector<8x8xi32> to vector<8x1xi32>
    %85 = vector.broadcast %84 : vector<8x1xi32> to vector<8x128xi32>
    %86 = arith.cmpi eq, %85, %1 : vector<8x128xi32>
    %87 = arith.extui %86 : vector<8x128xi1> to vector<8x128xi32>
    %88 = arith.sitofp %87 : vector<8x128xi32> to vector<8x128xf32>
    %89 = arith.addf %83, %88 : vector<8x128xf32>
    %90 = vector.extract_strided_slice %64 {offsets = [0, 4], sizes = [8, 1], strides = [1, 1]} : vector<8x8xi32> to vector<8x1xi32>
    %91 = vector.broadcast %90 : vector<8x1xi32> to vector<8x128xi32>
    %92 = arith.cmpi eq, %91, %1 : vector<8x128xi32>
    %93 = arith.extui %92 : vector<8x128xi1> to vector<8x128xi32>
    %94 = arith.sitofp %93 : vector<8x128xi32> to vector<8x128xf32>
    %95 = arith.addf %89, %94 : vector<8x128xf32>
    %96 = vector.extract_strided_slice %64 {offsets = [0, 5], sizes = [8, 1], strides = [1, 1]} : vector<8x8xi32> to vector<8x1xi32>
    %97 = vector.broadcast %96 : vector<8x1xi32> to vector<8x128xi32>
    %98 = arith.cmpi eq, %97, %1 : vector<8x128xi32>
    %99 = arith.extui %98 : vector<8x128xi1> to vector<8x128xi32>
    %100 = arith.sitofp %99 : vector<8x128xi32> to vector<8x128xf32>
    %101 = arith.addf %95, %100 : vector<8x128xf32>
    %102 = vector.extract_strided_slice %64 {offsets = [0, 6], sizes = [8, 1], strides = [1, 1]} : vector<8x8xi32> to vector<8x1xi32>
    %103 = vector.broadcast %102 : vector<8x1xi32> to vector<8x128xi32>
    %104 = arith.cmpi eq, %103, %1 : vector<8x128xi32>
    %105 = arith.extui %104 : vector<8x128xi1> to vector<8x128xi32>
    %106 = arith.sitofp %105 : vector<8x128xi32> to vector<8x128xf32>
    %107 = arith.addf %101, %106 : vector<8x128xf32>
    %108 = vector.extract_strided_slice %64 {offsets = [0, 7], sizes = [8, 1], strides = [1, 1]} : vector<8x8xi32> to vector<8x1xi32>
    %109 = vector.broadcast %108 : vector<8x1xi32> to vector<8x128xi32>
    %110 = arith.cmpi eq, %109, %1 : vector<8x128xi32>
    %111 = arith.extui %110 : vector<8x128xi1> to vector<8x128xi32>
    %112 = arith.sitofp %111 : vector<8x128xi32> to vector<8x128xf32>
    %113 = arith.addf %107, %112 : vector<8x128xf32>
    %114 = arith.mulf %113, %5 : vector<8x128xf32>
    %cst_9 = arith.constant dense<0.000000e+00> : vector<8xf32>
    %115 = vector.multi_reduction <add>, %114, %cst_9 [1] : vector<8x128xf32> to vector<8xf32>
    %116 = vector.shape_cast %115 : vector<8xf32> to vector<8x1xf32>
    %cst_10 = arith.constant dense<0.000000e+00> : vector<8x128xf32>
    %117 = tpu.matmul %114, %0, %cst_10 {dimension_numbers = #tpu.dot_dimension_numbers<[1], [0], [0], [1], [0, 0, 1, 1], [], []>} : vector<8x128xf32>, vector<128x128xf32>, vector<8x128xf32> -> vector<8x128xf32>
    %cst_11 = arith.constant 9.99999971E-10 : f32
    %118 = vector.broadcast %cst_11 : f32 to vector<8x1xf32>
    %119 = arith.maximumf %116, %118 : vector<8x1xf32>
    %120 = vector.broadcast %119 : vector<8x1xf32> to vector<8x128xf32>
    %121 = arith.divf %117, %120 : vector<8x128xf32>
    %c0_12 = arith.constant 0 : index
    %c0_13 = arith.constant 0 : index
    %122 = vector.load %arg9[%c0_12, %c0_13] : memref<8x512xf32, #tpu.memory_space<vmem>>, vector<8x128xf32>
    tpu.vector_store %arg9[%c0_12, %c0_13], %63 {strides = array<i32>} : memref<8x512xf32, #tpu.memory_space<vmem>>, vector<8x128xf32>,
    %c0_14 = arith.constant 0 : index
    %c128 = arith.constant 128 : index
    %123 = vector.load %arg9[%c0_14, %c128] : memref<8x512xf32, #tpu.memory_space<vmem>>, vector<8x128xf32>
    tpu.vector_store %arg9[%c0_14, %c128], %121 {strides = array<i32>} : memref<8x512xf32, #tpu.memory_space<vmem>>, vector<8x128xf32>,
    %124 = arith.subf %63, %121 : vector<8x128xf32>
    %125 = math.absf %124 : vector<8x128xf32>
    %c0_15 = arith.constant 0 : index
    %c256 = arith.constant 256 : index
    %126 = vector.load %arg9[%c0_15, %c256] : memref<8x512xf32, #tpu.memory_space<vmem>>, vector<8x128xf32>
    tpu.vector_store %arg9[%c0_15, %c256], %125 {strides = array<i32>} : memref<8x512xf32, #tpu.memory_space<vmem>>, vector<8x128xf32>,
    %127 = arith.mulf %63, %121 : vector<8x128xf32>
    %c0_16 = arith.constant 0 : index
    %c384 = arith.constant 384 : index
    %128 = vector.load %arg9[%c0_16, %c384] : memref<8x512xf32, #tpu.memory_space<vmem>>, vector<8x128xf32>
    tpu.vector_store %arg9[%c0_16, %c384], %127 {strides = array<i32>} : memref<8x512xf32, #tpu.memory_space<vmem>>, vector<8x128xf32>,
    %c0_17 = arith.constant 0 : index
    %c0_18 = arith.constant 0 : index
    %129 = vector.load %arg9[%c0_17, %c0_18] : memref<8x512xf32, #tpu.memory_space<vmem>>, vector<8x512xf32>
    %c0_19 = arith.constant 0 : index
    %c0_20 = arith.constant 0 : index
    %130 = vector.load %arg4[%c0_19, %c0_20] : memref<512x512xf32, #tpu.memory_space<vmem>>, vector<512x512xf32>
    %cst_21 = arith.constant dense<0.000000e+00> : vector<8x512xf32>
    %131 = tpu.matmul %129, %130, %cst_21 {dimension_numbers = #tpu.dot_dimension_numbers<[1], [0], [0], [1], [0, 0, 1, 1], [], []>} : vector<8x512xf32>, vector<512x512xf32>, vector<8x512xf32> -> vector<8x512xf32>
    %c0_22 = arith.constant 0 : index
    %c0_23 = arith.constant 0 : index
    %132 = vector.load %arg5[%c0_22, %c0_23] : memref<1x512xf32, #tpu.memory_space<vmem>>, vector<1x512xf32>
    %133 = vector.broadcast %132 : vector<1x512xf32> to vector<8x512xf32>
    %134 = arith.addf %131, %133 : vector<8x512xf32>
    %cst_24 = arith.constant 0.000000e+00 : f32
    %135 = vector.broadcast %cst_24 : f32 to vector<8x512xf32>
    %136 = arith.maximumf %134, %135 : vector<8x512xf32>
    %c0_25 = arith.constant 0 : index
    %c0_26 = arith.constant 0 : index
    %137 = vector.load %arg6[%c0_25, %c0_26] : memref<512x128xf32, #tpu.memory_space<vmem>>, vector<512x128xf32>
    %cst_27 = arith.constant dense<0.000000e+00> : vector<8x128xf32>
    %138 = tpu.matmul %136, %137, %cst_27 {dimension_numbers = #tpu.dot_dimension_numbers<[1], [0], [0], [1], [0, 0, 1, 1], [], []>} : vector<8x512xf32>, vector<512x128xf32>, vector<8x128xf32> -> vector<8x128xf32>
    %c0_28 = arith.constant 0 : index
    %c0_29 = arith.constant 0 : index
    %139 = vector.load %arg7[%c0_28, %c0_29] : memref<1x128xf32, #tpu.memory_space<vmem>>, vector<1x128xf32>
    %140 = vector.broadcast %139 : vector<1x128xf32> to vector<8x128xf32>
    %141 = arith.addf %138, %140 : vector<8x128xf32>
    %c0_30 = arith.constant 0 : index
    %c0_31 = arith.constant 0 : index
    %142 = vector.load %arg8[%c0_30, %c0_31] : memref<8x128xf32, #tpu.memory_space<vmem>>, vector<8x128xf32>
    tpu.vector_store %arg8[%c0_30, %c0_31], %141 {strides = array<i32>} : memref<8x128xf32, #tpu.memory_space<vmem>>, vector<8x128xf32>,
    return
  }
  func.func @transform_0(%arg0: i32) -> (i32, i32) {
    %c0_i32 = arith.constant 0 : i32
    %c0_i32_0 = arith.constant 0 : i32
    return %arg0, %c0_i32 : i32, i32
  }
  func.func @transform_1(%arg0: i32) -> (i32, i32) {
    %c0_i32 = arith.constant 0 : i32
    %c0_i32_0 = arith.constant 0 : i32
    return %arg0, %c0_i32 : i32, i32
  }
  func.func @transform_2(%arg0: i32) -> (i32, i32) {
    %c0_i32 = arith.constant 0 : i32
    %c0_i32_0 = arith.constant 0 : i32
    %c0_i32_1 = arith.constant 0 : i32
    return %c0_i32, %c0_i32_0 : i32, i32
  }
  func.func @transform_3(%arg0: i32) -> (i32, i32) {
    %c0_i32 = arith.constant 0 : i32
    %c0_i32_0 = arith.constant 0 : i32
    %c0_i32_1 = arith.constant 0 : i32
    return %c0_i32, %c0_i32_0 : i32, i32
  }
  func.func @transform_4(%arg0: i32) -> (i32, i32) {
    %c0_i32 = arith.constant 0 : i32
    %c0_i32_0 = arith.constant 0 : i32
    %c0_i32_1 = arith.constant 0 : i32
    return %c0_i32, %c0_i32_0 : i32, i32
  }
  func.func @transform_5(%arg0: i32) -> (i32, i32) {
    %c0_i32 = arith.constant 0 : i32
    %c0_i32_0 = arith.constant 0 : i32
    %c0_i32_1 = arith.constant 0 : i32
    return %c0_i32, %c0_i32_0 : i32, i32
  }
  func.func @transform_6(%arg0: i32) -> (i32, i32) {
    %c0_i32 = arith.constant 0 : i32
    %c0_i32_0 = arith.constant 0 : i32
    %c0_i32_1 = arith.constant 0 : i32
    return %c0_i32, %c0_i32_0 : i32, i32
  }
  func.func @transform_7(%arg0: i32) -> (i32, i32) {
    %c0_i32 = arith.constant 0 : i32
    %c0_i32_0 = arith.constant 0 : i32
    return %arg0, %c0_i32 : i32, i32
  }
}

</mosaic_0001>

<bundles_post_ra>
// kernel: tpu_custom_call.1
= control target key start
LH: loop header
LB: loop body
LE: loop exit
PB: predicated region body
PF: predicated region fallthrough
CT: control target
= control target key end

     0   :  { %12 = vsyncpa [#allocation4], 0  ;;  %s2156_s0 = inlined_call_operand.hbm [shape: s32[8,8], index: 0, kind: input, shape index: {}]   ;;  %s2157_s1 = inlined_call_operand.hbm [shape: s32[8,8], index: 1, kind: input, shape index: {}]   ;;  %s2158_s2 = inlined_call_operand.hbm [shape: f32[128,128], index: 2, kind: input, shape index: {}]   ;;  %s2159_s3 = inlined_call_operand.hbm [shape: f32[512,512], index: 3, kind: input, shape index: {}]   ;;  %s2160_s4 = inlined_call_operand.vmem [shape: f32[1,512], index: 4, kind: input, shape index: {}]   ;;  %s2161_s5 = inlined_call_operand.hbm [shape: f32[512,128], index: 5, kind: input, shape index: {}]   ;;  %s2162_s6 = inlined_call_operand.vmem [shape: f32[1,128], index: 6, kind: input, shape index: {}]   ;;  %s2163_s7 = inlined_call_operand.hbm [shape: f32[8,128], index: 7, kind: output, shape index: {}]  }
   0x1   :  { %13 = vsyncpa [#allocation7], 0 }
   0x2   :  { %14 = vsyncpa [#allocation10], 0 }
   0x3   :  { %15 = vsyncpa [#allocation5], 0  ;;  %s1931_s24 = smov [#allocation6]   ;;  %s1932_s26 = smov [#allocation9]  }
   0x4   :  { %s32_s25 = sshll.u32 %s1931_s24, 4  ;;  %s53_s27 = sshll.u32 %s1932_s26, 4  ;;  %s33_s25 = int_to_ptr.vmem [resolvable:$true] %s32_s25  ;;  %s1992_s27 = int_to_ptr.vmem [resolvable:$true] %s53_s27 }
   0x5   :  { %s1791_s30 = scalar_lea.hbm %s2157_s1, 128 }
   0x6   :  { %p1792_p0 = scmp.ne.s32.totalorder %s2157_s1, %s1791_s30  ;;  %p1795_p1 = scmp.lt.u32.totalorder %s1791_s30, %s2157_s1 }
   0x8   :  { %p1797_p2 = pnand %p1795_p1, %p1792_p0 }
   0xa   :  { %1800 = shalt.err (!%p1797_p2)
}
   0xb   :  { %s1801_s12 = scalar_lea.vmem %s33_s25, 128  ;;  %p1806_p4 = scmp.lt.s32.totalorder %s33_s25, %s33_s25 }
   0xc   :  { %p1802_p3 = scmp.ne.s32.totalorder %s33_s25, %s1801_s12  ;;  %p1807_p5 = scmp.lt.s32.totalorder %s1801_s12, %s1801_s12 }
   0xe   :  { %p1808_p6 = por %p1807_p5, %p1806_p4 }
  0x10   :  { %p1809_p7 = pnand %p1808_p6, %p1802_p3 }
  0x12   :  { %1812 = shalt.err (!%p1809_p7)
}
  0x13   :  { %35 = dma.hbm_to_vmem [thread:$0]  %s2157_s1, 128, %s33_s25, [#allocation7]  }
  0x14   :  { %s1813_s17 = scalar_lea.hbm %s2159_s3, 32768 }
  0x15   :  { %p1814_p8 = scmp.ne.s32.totalorder %s2159_s3, %s1813_s17  ;;  %p1817_p9 = scmp.lt.u32.totalorder %s1813_s17, %s2159_s3 }
  0x17   :  { %p1819_p10 = pnand %p1817_p9, %p1814_p8 }
  0x19   :  { %1822 = shalt.err (!%p1819_p10)
}
  0x1a   :  { %s1823_s22 = scalar_lea.vmem %s1992_s27, 32768  ;;  %p1828_p12 = scmp.lt.s32.totalorder %s1992_s27, %s1992_s27 }
  0x1b   :  { %p1824_p11 = scmp.ne.s32.totalorder %s1992_s27, %s1823_s22  ;;  %p1829_p13 = scmp.lt.s32.totalorder %s1823_s22, %s1823_s22 }
  0x1d   :  { %p1830_p0 = por %p1829_p13, %p1828_p12 }
  0x1f   :  { %p1831_p1 = pnand %p1830_p0, %p1824_p11 }
  0x21   :  { %1834 = shalt.err (!%p1831_p1)
}
  0x22   :  { %s1933_s1 = smov 512   ;;  %s1934_s23 = smov 32  }
  0x23   :  { %59 = dma.hbm_to_vmem [thread:$0]  %s2159_s3, 32768, %s1992_s27, [#allocation10], %s1933_s1, %s1933_s1, %s1934_s23  }
  0x24   :  { %s1935_s26 = smov [#allocation3]   ;;  %s1936_s29 = smov [#allocation8]  }
  0x25   :  { %s22_s28 = sshll.u32 %s1935_s26, 4  ;;  %s41_s30 = sshll.u32 %s1936_s29, 4  ;;  %s23_s28 = int_to_ptr.vmem [resolvable:$true] %s22_s28  ;;  %s2023_s30 = int_to_ptr.vmem [resolvable:$true] %s41_s30 }
  0x26   :  { %s1835_s10 = scalar_lea.hbm %s2156_s0, 128 }
  0x27   :  { %p1836_p2 = scmp.ne.s32.totalorder %s2156_s0, %s1835_s10  ;;  %p1839_p3 = scmp.lt.u32.totalorder %s1835_s10, %s2156_s0 }
  0x29   :  { %p1841_p4 = pnand %p1839_p3, %p1836_p2 }
  0x2b   :  { %1844 = shalt.err (!%p1841_p4)
}
  0x2c   :  { %s1845_s3 = scalar_lea.vmem %s23_s28, 128  ;;  %p1850_p6 = scmp.lt.s32.totalorder %s23_s28, %s23_s28 }
  0x2d   :  { %p1846_p5 = scmp.ne.s32.totalorder %s23_s28, %s1845_s3  ;;  %p1851_p7 = scmp.lt.s32.totalorder %s1845_s3, %s1845_s3 }
  0x2f   :  { %p1852_p8 = por %p1851_p7, %p1850_p6 }
  0x31   :  { %p1853_p9 = pnand %p1852_p8, %p1846_p5 }
  0x33   :  { %1856 = shalt.err (!%p1853_p9)
}
  0x34   :  { %25 = dma.hbm_to_vmem [thread:$0]  %s2156_s0, 128, %s23_s28, [#allocation4]  }
  0x35   :  { %s1857_s18 = scalar_lea.hbm %s2158_s2, 2048 }
  0x36   :  { %p1858_p10 = scmp.ne.s32.totalorder %s2158_s2, %s1857_s18  ;;  %p1861_p11 = scmp.lt.u32.totalorder %s1857_s18, %s2158_s2 }
  0x38   :  { %p1863_p12 = pnand %p1861_p11, %p1858_p10 }
  0x3a   :  { %1866 = shalt.err (!%p1863_p12)
}
  0x3b   :  { %s1867_s1 = scalar_lea.vmem %s2023_s30, 2048  ;;  %p1872_p0 = scmp.lt.s32.totalorder %s2023_s30, %s2023_s30 }
  0x3c   :  { %p1868_p13 = scmp.ne.s32.totalorder %s2023_s30, %s1867_s1  ;;  %p1873_p1 = scmp.lt.s32.totalorder %s1867_s1, %s1867_s1 }
  0x3e   :  { %p1874_p2 = por %p1873_p1, %p1872_p0 }
  0x40   :  { %p1875_p3 = pnand %p1874_p2, %p1868_p13 }
  0x42   :  { %1878 = shalt.err (!%p1875_p3)
}
  0x43   :  { %s1937_s0 = smov 128   ;;  %s1938_s23 = smov 8  }
  0x44   :  { %47 = dma.hbm_to_vmem [thread:$0]  %s2158_s2, 2048, %s2023_s30, [#allocation7], %s1937_s0, %s1937_s0, %s1938_s23  }
  0x45   :  { %s1939_s26 = smov [#allocation11]   ;;  %s1879_s9 = scalar_lea.hbm %s2161_s5, 8192 }
  0x46   :  { %s67_s28 = sshll.u32 %s1939_s26, 4  ;;  %p1880_p4 = scmp.ne.s32.totalorder %s2161_s5, %s1879_s9  ;;  %s68_s28 = int_to_ptr.vmem [resolvable:$true] %s67_s28 }
  0x47   :  { %p1883_p5 = scmp.lt.u32.totalorder %s1879_s9, %s2161_s5 }
  0x49   :  { %p1885_p6 = pnand %p1883_p5, %p1880_p4 }
  0x4b   :  { %1888 = shalt.err (!%p1885_p6)
}
  0x4c   :  { %s1889_s14 = scalar_lea.vmem %s68_s28, 8192  ;;  %p1894_p8 = scmp.lt.s32.totalorder %s68_s28, %s68_s28 }
  0x4d   :  { %p1890_p7 = scmp.ne.s32.totalorder %s68_s28, %s1889_s14  ;;  %p1895_p9 = scmp.lt.s32.totalorder %s1889_s14, %s1889_s14 }
  0x4f   :  { %p1896_p10 = por %p1895_p9, %p1894_p8 }
  0x51   :  { %p1897_p11 = pnand %p1896_p10, %p1890_p7 }
  0x53   :  { %1900 = shalt.err (!%p1897_p11)
}
  0x54   :  { %73 = dma.hbm_to_vmem [thread:$0]  %s2161_s5, 8192, %s68_s28, [#allocation10], %s1937_s0, %s1937_s0, %s1938_s23  }
  0x55   :  { %1923 = dma.done.wait [#allocation4], 128  }
  0x56   :  { %1924 = vsyncadd [#allocation4], 4294967168 }
  0x57   :  { %1925 = dma.done.wait [#allocation7], 2176  }
  0x58   :  { %1926 = vsyncadd [#allocation7], 4294965120 }
  0x59   :  { %1927 = dma.done.wait [#allocation10], 40960  }
  0x5a   :  { %1928 = vsyncadd [#allocation10], 4294926336  ;;  %v1940_v0 = vmov 0   ;;  %v2066_v1 = vld [vmem:[#allocation6] sm:$0xff]  ;;  %v2068_v2 = vld [vmem:[#allocation3] sm:$0xff]  ;;  %v1941_v3 = vmov 1   ;;  %v107_v40 = vlaneseq }
  0x5b   :  { %1775 = vset.pattern.permute.xlu1 %v1940_v0  ;;  %1773 = vset.pattern.permute.xlu0 %v1940_v0  ;;  %v91_v4 = vld [vmem:[#allocation8] sm:$0xff]  ;;  %v92_v5 = vld [vmem:[#allocation8 + $0x8] sm:$0xff]  ;;  %v1942_v6 = vmov 2   ;;  %v1943_v8 = vmov 0.0|0.0   ;;  %v93_v9 = vld [vmem:[#allocation8 + $0x10] sm:$0xff]  ;;  %v1944_v12 = vmov 3  }
  0x5c   :  { %247 = vperm.xlu0 %1773, %v2066_v1   ;;  %114 = vperm.xlu1 %1775, %v2068_v2   ;;  %v1377_v7 = vpack.c.bf16 %v92_v5, %v91_v4  ;;  %v94_v10 = vld [vmem:[#allocation8 + $0x18] sm:$0xff]  ;;  %v1945_v13 = vmov 4   ;;  %v95_v14 = vld [vmem:[#allocation8 + $0x20] sm:$0xff]  ;;  %v96_v15 = vld [vmem:[#allocation8 + $0x28] sm:$0xff]  ;;  %v1946_v17 = vmov 5   ;;  %v1947_v21 = vmov 7  }
  0x5d   :  { %1400 = vmatprep.subr.bf16.mxu1 %v1943_v8  ;;  %1376 = vmatprep.subr.bf16.mxu0 %v1943_v8  ;;  %v1380_v11 = vpack.c.bf16 %v94_v10, %v93_v9  ;;  %v1383_v16 = vpack.c.bf16 %v96_v15, %v95_v14  ;;  %v97_v18 = vld [vmem:[#allocation8 + $0x30] sm:$0xff]  ;;  %v98_v19 = vld [vmem:[#allocation8 + $0x38] sm:$0xff]  ;;  %v99_v22 = vld [vmem:[#allocation8 + $0x40] sm:$0xff]  ;;  %v1948_v30 = vmov 6   ;;  %vm1949_vm0 = vmmov 0   ;;  %s1951_s15 = smov [#allocation12]  }
  0x5e   :  { %1402 = vmatpush3.bf16.msra.mxu1 %v1377_v7  ;;  %1378 = vmatpush3.bf16.msra.mxu0 %v1377_v7  ;;  %v1386_v20 = vpack.c.bf16 %v98_v19, %v97_v18  ;;  %v100_v23 = vld [vmem:[#allocation8 + $0x48] sm:$0xff]  ;;  %v101_v25 = vld [vmem:[#allocation8 + $0x50] sm:$0xff]  ;;  %v102_v26 = vld [vmem:[#allocation8 + $0x58] sm:$0xff]  ;;  %v1950_v35 = vmov 0.0   ;;  %v108_v42 = vand.u32 127, %v107_v40  ;;  %s1173_s16 = sshll.u32 %s1951_s15, 4  ;;  %s1174_s16 = int_to_ptr.vmem [resolvable:$true] %s1173_s16 }
  0x5f   :  { %1403 = vmatprep.subr.bf16.mxu1 %v1943_v8  ;;  %1379 = vmatprep.subr.bf16.mxu0 %v1943_v8  ;;  %v1389_v24 = vpack.c.bf16 %v100_v23, %v99_v22  ;;  %v1392_v27 = vpack.c.bf16 %v102_v26, %v101_v25  ;;  %v103_v28 = vld [vmem:[#allocation8 + $0x60] sm:$0xff]  ;;  %v104_v29 = vld [vmem:[#allocation8 + $0x68] sm:$0xff]  ;;  %v105_v32 = vld [vmem:[#allocation8 + $0x70] sm:$0xff]  ;;  %s1901_s17 = scalar_lea.vmem %s1174_s16, 128  ;;  %p1906_p13 = scmp.lt.s32.totalorder %s1174_s16, %s1174_s16 }
  0x60   :  { %1774 = vset.pattern.permute.xlu0 %v1941_v3  ;;  %1776 = vset.pattern.permute.xlu1 %v1941_v3  ;;  %v1395_v31 = vpack.c.bf16 %v104_v29, %v103_v28  ;;  %v106_v33 = vld [vmem:[#allocation8 + $0x78] sm:$0xff]  ;;  %vm109_vm14 = vcmp.ne.s32.totalorder %v108_v42, 0  ;;  %v390_v23 = vld [vmem:[#allocation9 + $0x8] sm:$0xff]  ;;  %v389_v28 = vld [vmem:[#allocation9] sm:$0xff]  ;;  %p1902_p12 = scmp.ne.s32.totalorder %s1174_s16, %s1901_s17  ;;  %p1907_p0 = scmp.lt.s32.totalorder %s1901_s17, %s1901_s17 }
  0x61   :  { %254 = vperm.xlu0 %1774, %v2066_v1   ;;  %121 = vperm.xlu1 %1776, %v2068_v2   ;;  %v1398_v34 = vpack.c.bf16 %v106_v33, %v105_v32  ;;  %v392_v25 = vld [vmem:[#allocation9 + $0x18] sm:$0xff]  ;;  %v393_v29 = vld [vmem:[#allocation9 + $0x20] sm:$0xff]  ;;  %v391_v32 = vld [vmem:[#allocation9 + $0x10] sm:$0xff] }
  0x62   :  { %1405 = vmatpush3.bf16.msra.mxu1 %v1380_v11  ;;  %1381 = vmatpush3.bf16.msra.mxu0 %v1380_v11  ;;  %v395_v33 = vld [vmem:[#allocation9 + $0x30] sm:$0xff]  ;;  %p1908_p1 = por %p1907_p0, %p1906_p13 }
  0x63   :  { %1406 = vmatprep.subr.bf16.mxu1 %v1943_v8  ;;  %1382 = vmatprep.subr.bf16.mxu0 %v1943_v8 }
  0x64   :  { %1373 = vmatprep.mubr.msk.f32.mxu1 %vm1949_vm0, %v1950_v35  ;;  %1338 = vmatprep.mubr.msk.f32.mxu0 %vm1949_vm0, %v1950_v35  ;;  %p1909_p2 = pnand %p1908_p1, %p1902_p12 }
  0x65   :  { %1778 = vset.pattern.permute.xlu0 %v1942_v6  ;;  %1777 = vset.pattern.permute.xlu1 %v1942_v6 }
  0x66   :  { %128 = vperm.xlu0 %1778, %v2068_v2   ;;  %261 = vperm.xlu1 %1777, %v2066_v1  }
  0x67   :  { %1408 = vmatpush3.bf16.msra.mxu1 %v1383_v16  ;;  %1384 = vmatpush3.bf16.msra.mxu0 %v1383_v16 }
  0x68   :  { %1409 = vmatprep.subr.bf16.mxu1 %v1943_v8  ;;  %1385 = vmatprep.subr.bf16.mxu0 %v1943_v8 }
  0x6a   :  { %1779 = vset.pattern.permute.xlu1 %v1944_v12  ;;  %1780 = vset.pattern.permute.xlu0 %v1945_v13  ;;  %v1184_v12 = vsel %vm109_vm14, 1.0, %v1950_v35 }
  0x6b   :  { %268 = vperm.xlu1 %1779, %v2066_v1   ;;  %275 = vperm.xlu0 %1780, %v2066_v1  }
  0x6c   :  { %1411 = vmatpush3.bf16.msra.mxu1 %v1386_v20  ;;  %1387 = vmatpush3.bf16.msra.mxu0 %v1386_v20 }
  0x6d   :  { %1412 = vmatprep.subr.bf16.mxu1 %v1943_v8  ;;  %1388 = vmatprep.subr.bf16.mxu0 %v1943_v8 }
  0x6f   :  { %135 = vperm.xlu1 %1779, %v2068_v2   ;;  %1783 = vset.pattern.permute.xlu0 %v1946_v17 }
  0x70   :  { %149 = vperm.xlu0 %1783, %v2068_v2   ;;  %1414 = vmatpush3.bf16.msra.mxu1 %v1389_v24 }
  0x71   :  { %1415 = vmatprep.subr.bf16.mxu1 %v1943_v8  ;;  %1390 = vmatpush3.bf16.msra.mxu0 %v1389_v24  ;;  %v394_v24 = vld [vmem:[#allocation9 + $0x28] sm:$0xff] }
  0x72   :  { %1391 = vmatprep.subr.bf16.mxu0 %v1943_v8  ;;  %v1424_v26 = vpack.c.bf16 %v394_v24, %v390_v23 }
  0x73   :  { %1781 = vset.pattern.permute.xlu1 %v1945_v13 }
  0x74   :  { %142 = vperm.xlu1 %1781, %v2068_v2   ;;  %1785 = vset.pattern.permute.xlu0 %v1947_v21 }
  0x75   :  { %296 = vperm.xlu0 %1785, %v2066_v1   ;;  %1417 = vmatpush3.bf16.msra.mxu1 %v1392_v27 }
  0x76   :  { %1418 = vmatprep.subr.bf16.mxu1 %v1943_v8  ;;  %1393 = vmatpush3.bf16.msra.mxu0 %v1392_v27  ;;  %v396_v27 = vld [vmem:[#allocation9 + $0x38] sm:$0xff] }
  0x77   :  { %1394 = vmatprep.subr.bf16.mxu0 %v1943_v8 }
  0x78   :  { %1782 = vset.pattern.permute.xlu1 %v1946_v17 }
  0x79   :  { %282 = vperm.xlu1 %1782, %v2066_v1   ;;  %1420 = vmatpush3.bf16.msra.mxu1 %v1395_v31 }
  0x7a   :  { %1421 = vmatprep.subr.bf16.mxu1 %v1943_v8  ;;  %1396 = vmatpush3.bf16.msra.mxu0 %v1395_v31  ;;  %v1426_v31 = vpack.c.bf16 %v393_v29, %v389_v28  ;;  %v435_v29 = vld [vmem:[#allocation9 + $0x170] sm:$0xff] }
  0x7b   :  { %1397 = vmatprep.subr.bf16.mxu0 %v1943_v8 }
  0x7d   :  { %1784 = vset.pattern.permute.xlu1 %v1948_v30  ;;  %1423 = vmatpush3.bf16.msra.mxu1 %v1398_v34  ;;  %v1552_v30 = vpack.c.bf16 %v396_v27, %v392_v25  ;;  %v429_v25 = vld [vmem:[#allocation9 + $0x140] sm:$0xff]  ;;  %v431_v27 = vld [vmem:[#allocation9 + $0x150] sm:$0xff] }
  0x7e   :  { %289 = vperm.xlu1 %1784, %v2066_v1   ;;  %1399 = vmatpush3.bf16.msra.mxu0 %v1398_v34  ;;  %v398_v34 = vld [vmem:[#allocation9 + $0x48] sm:$0xff] }
  0x7f   :  { %1425 = vmatprep.subr.bf16.mxu0 %v1424_v26  ;;  %1553 = vmatprep.subr.bf16.mxu1 %v1552_v30  ;;  %v433_v26 = vld [vmem:[#allocation9 + $0x160] sm:$0xff]  ;;  %v438_v30 = vld [vmem:[#allocation9 + $0x188] sm:$0xff] }
  0x82   :  { %156 = vperm.xlu1 %1784, %v2068_v2  }
  0x86   :  { %1786 = vset.pattern.permute.xlu1 %v1947_v21 }
  0x87   :  { %163 = vperm.xlu1 %1786, %v2068_v2  }
  0xdb   :  { %v115_v36 = vpop.permute.xlu1 %114  ;;  %v248_v38 = vpop.permute.xlu0 %247 }
  0xdc   :  { %vm249_vm1 = vcmp.eq.s32.totalorder %v248_v38, %v108_v42  ;;  %vm116_vm7 = vcmp.eq.s32.totalorder %v115_v36, %v108_v42  ;;  %v1554_v36 = vpack.c.bf16 %v395_v33, %v391_v32  ;;  %v404_v38 = vld [vmem:[#allocation9 + $0x78] sm:$0xff] }
  0xdd   :  { %v1193_v46 = vsel %vm249_vm1, 1.0, %v1950_v35  ;;  %v1185_v60 = vsel %vm116_vm7, 1.0, %v1950_v35  ;;  %v440_v32 = vld [vmem:[#allocation9 + $0x198] sm:$0xff] }
  0xde   :  { %v444_v33 = vld [vmem:[#allocation9 + $0x1b8] sm:$0xff] }
  0xe0   :  { %v122_v37 = vpop.permute.xlu1 %121  ;;  %v255_v41 = vpop.permute.xlu0 %254 }
  0xe1   :  { %vm256_vm2 = vcmp.eq.s32.totalorder %v255_v41, %v108_v42  ;;  %vm123_vm5 = vcmp.eq.s32.totalorder %v122_v37, %v108_v42  ;;  %v402_v37 = vld [vmem:[#allocation9 + $0x68] sm:$0xff] }
  0xe2   :  { %v1194_v47 = vsel %vm256_vm2, 1.0, %v1950_v35  ;;  %v1186_v55 = vsel %vm123_vm5, 1.0, %v1950_v35 }
  0xe3   :  { %v259_v49 = vadd.f32 %v1194_v47, %v1193_v46  ;;  %v126_v62 = vadd.f32 %v1186_v55, %v1185_v60  ;;  %v403_v46 = vld [vmem:[#allocation9 + $0x70] sm:$0xff]  ;;  %v406_v47 = vld [vmem:[#allocation9 + $0x88] sm:$0xff]  ;;  %v409_v55 = vld [vmem:[#allocation9 + $0xa0] sm:$0xff] }
  0xe4   :  { %v418_v60 = vld [vmem:[#allocation9 + $0xe8] sm:$0xff] }
  0xe5   :  { %v262_v39 = vpop.permute.xlu1 %261  ;;  %v129_v44 = vpop.permute.xlu0 %128 }
  0xe6   :  { %vm263_vm3 = vcmp.eq.s32.totalorder %v262_v39, %v108_v42  ;;  %vm130_vm8 = vcmp.eq.s32.totalorder %v129_v44, %v108_v42  ;;  %v1428_v39 = vpack.c.bf16 %v402_v37, %v398_v34  ;;  %v399_v44 = vld [vmem:[#allocation9 + $0x50] sm:$0xff]  ;;  %v1446_v34 = vpack.c.bf16 %v433_v26, %v429_v25 }
  0xe7   :  { %v1195_v50 = vsel %vm263_vm3, 1.0, %v1950_v35  ;;  %v1187_v61 = vsel %vm130_vm8, 1.0, %v1950_v35  ;;  %v475_v26 = vld [vmem:[#allocation9 + $0x2b0] sm:$0xff] }
  0xe8   :  { %v266_v54 = vadd.f32 %v1195_v50, %v259_v49  ;;  %v133_v2 = vadd.f32 %v1187_v61, %v126_v62  ;;  %v1558_v49 = vpack.c.bf16 %v403_v46, %v399_v44  ;;  %v416_v61 = vld [vmem:[#allocation9 + $0xd8] sm:$0xff]  ;;  %v450_v44 = vld [vmem:[#allocation9 + $0x1e8] sm:$0xff] }
  0xe9   :  { %v452_v46 = vld [vmem:[#allocation9 + $0x1f8] sm:$0xff] }
  0xea   :  { %v269_v43 = vpop.permute.xlu1 %268  ;;  %v276_v48 = vpop.permute.xlu0 %275 }
  0xeb   :  { %vm270_vm4 = vcmp.eq.s32.totalorder %v269_v43, %v108_v42  ;;  %vm277_vm6 = vcmp.eq.s32.totalorder %v276_v48, %v108_v42  ;;  %v401_v43 = vld [vmem:[#allocation9 + $0x60] sm:$0xff]  ;;  %v410_v48 = vld [vmem:[#allocation9 + $0xa8] sm:$0xff] }
  0xec   :  { %v1196_v52 = vsel %vm270_vm4, 1.0, %v1950_v35  ;;  %v1197_v58 = vsel %vm277_vm6, 1.0, %v1950_v35  ;;  %v1432_v50 = vpack.c.bf16 %v410_v48, %v406_v47 }
  0xed   :  { %v273_v56 = vadd.f32 %v1196_v52, %v266_v54  ;;  %v412_v52 = vld [vmem:[#allocation9 + $0xb8] sm:$0xff] }
  0xee   :  { %v136_v45 = vpop.permute.xlu1 %135 }
  0xef   :  { %v150_v53 = vpop.permute.xlu0 %149  ;;  %vm137_vm9 = vcmp.eq.s32.totalorder %v136_v45, %v108_v42  ;;  %v280_v0 = vadd.f32 %v1197_v58, %v273_v56  ;;  %v407_v56 = vld [vmem:[#allocation9 + $0x90] sm:$0xff] }
  0xf0   :  { %v1188_v1 = vsel %vm137_vm9, 1.0, %v1950_v35  ;;  %vm151_vm15 = vcmp.eq.s32.totalorder %v150_v53, %v108_v42  ;;  %v405_v53 = vld [vmem:[#allocation9 + $0x80] sm:$0xff] }
  0xf1   :  { %v140_v6 = vadd.f32 %v1188_v1, %v133_v2  ;;  %v1190_v13 = vsel %vm151_vm15, 1.0, %v1950_v35  ;;  %v1434_v58 = vpack.c.bf16 %v409_v55, %v405_v53  ;;  %v413_v1 = vld [vmem:[#allocation9 + $0xc0] sm:$0xff]  ;;  %v454_v55 = vld [vmem:[#allocation9 + $0x208] sm:$0xff] }
  0xf2   :  { %v417_v2 = vld [vmem:[#allocation9 + $0xe0] sm:$0xff] }
  0xf3   :  { %v143_v51 = vpop.permute.xlu1 %142 }
  0xf4   :  { %v297_v59 = vpop.permute.xlu0 %296  ;;  %vm144_vm11 = vcmp.eq.s32.totalorder %v143_v51, %v108_v42  ;;  %v408_v51 = vld [vmem:[#allocation9 + $0x98] sm:$0xff] }
  0xf5   :  { %vm298_vm12 = vcmp.eq.s32.totalorder %v297_v59, %v108_v42  ;;  %v1189_v4 = vsel %vm144_vm11, 1.0, %v1950_v35  ;;  %v1560_v54 = vpack.c.bf16 %v412_v52, %v408_v51  ;;  %v414_v59 = vld [vmem:[#allocation9 + $0xc8] sm:$0xff]  ;;  %v449_v51 = vld [vmem:[#allocation9 + $0x1e0] sm:$0xff]  ;;  %v447_v52 = vld [vmem:[#allocation9 + $0x1d0] sm:$0xff] }
  0xf6   :  { %v1200_v8 = vsel %vm298_vm12, 1.0, %v1950_v35  ;;  %v147_v10 = vadd.f32 %v1189_v4, %v140_v6  ;;  %v415_v4 = vld [vmem:[#allocation9 + $0xd0] sm:$0xff]  ;;  %v422_v6 = vld [vmem:[#allocation9 + $0x108] sm:$0xff] }
  0xf8   :  { %v283_v57 = vpop.permute.xlu1 %282  ;;  %v154_v17 = vadd.f32 %v1190_v13, %v147_v10  ;;  %v1438_v10 = vpack.c.bf16 %v417_v2, %v413_v1  ;;  %v421_v13 = vld [vmem:[#allocation9 + $0x100] sm:$0xff]  ;;  %v459_v2 = vld [vmem:[#allocation9 + $0x230] sm:$0xff] }
  0xf9   :  { %vm284_vm10 = vcmp.eq.s32.totalorder %v283_v57, %v108_v42  ;;  %v411_v57 = vld [vmem:[#allocation9 + $0xb0] sm:$0xff] }
  0xfa   :  { %v1198_v63 = vsel %vm284_vm10, 1.0, %v1950_v35  ;;  %v1562_v62 = vpack.c.bf16 %v411_v57, %v407_v56  ;;  %v458_v56 = vld [vmem:[#allocation9 + $0x228] sm:$0xff]  ;;  %v456_v57 = vld [vmem:[#allocation9 + $0x218] sm:$0xff] }
  0xfb   :  { %v287_v5 = vadd.f32 %v1198_v63, %v280_v0  ;;  %v1436_v63 = vpack.c.bf16 %v418_v60, %v414_v59  ;;  %v420_v0 = vld [vmem:[#allocation9 + $0xf8] sm:$0xff] }
  0xfd   :  { %v290_v3 = vpop.permute.xlu1 %289 }
  0xfe   :  { %vm291_vm13 = vcmp.eq.s32.totalorder %v290_v3, %v108_v42  ;;  %v1564_v3 = vpack.c.bf16 %v420_v0, %v416_v61  ;;  %v1456_v61 = vpack.c.bf16 %v458_v56, %v454_v55  ;;  %v455_v0 = vld [vmem:[#allocation9 + $0x210] sm:$0xff]  ;;  %v500_v55 = vld [vmem:[#allocation9 + $0x378] sm:$0xff] }
  0xff   :  { %v1199_v7 = vsel %vm291_vm13, 1.0, %v1950_v35 }
 0x100   :  { %v294_v9 = vadd.f32 %v1199_v7, %v287_v5  ;;  %v419_v5 = vld [vmem:[#allocation9 + $0xf0] sm:$0xff]  ;;  %v426_v7 = vld [vmem:[#allocation9 + $0x128] sm:$0xff] }
 0x101   :  { %v157_v11 = vpop.permute.xlu1 %156 }
 0x102   :  { %v301_v14 = vadd.f32 %v1200_v8, %v294_v9  ;;  %vm158_vm0 = vcmp.eq.s32.totalorder %v157_v11, %v108_v42  ;;  %v424_v8 = vld [vmem:[#allocation9 + $0x118] sm:$0xff]  ;;  %v1566_v11 = vpack.c.bf16 %v419_v5, %v415_v4  ;;  %v466_v4 = vld [vmem:[#allocation9 + $0x268] sm:$0xff] }
 0x103   :  { %v1191_v15 = vsel %vm158_vm0, 1.0, %v1950_v35  ;;  %v428_v9 = vld [vmem:[#allocation9 + $0x138] sm:$0xff] }
 0x104   :  { %v302_v16 = vmul.f32 %v1184_v12, %v301_v14  ;;  %v161_v19 = vadd.f32 %v1191_v15, %v154_v17  ;;  %v425_v14 = vld [vmem:[#allocation9 + $0x120] sm:$0xff]  ;;  %v423_v15 = vld [vmem:[#allocation9 + $0x110] sm:$0xff]  ;;  %v464_v5 = vld [vmem:[#allocation9 + $0x258] sm:$0xff] }
 0x105   :  { %v427_v17 = vld [vmem:[#allocation9 + $0x130] sm:$0xff] }
 0x106   :  { %303 = vadd.xlane.f32.xlu1 %v302_v16  ;;  %v164_v18 = vpop.permute.xlu1 %163  ;;  %1374 = vmatmul.mubr.f32.vlgmr.msra.gmra.mrb[0].mxu1 %v302_v16  ;;  %v1568_v16 = vpack.c.bf16 %v428_v9, %v424_v8  ;;  %v1570_v23 = vpack.c.bf16 %v427_v17, %v423_v15  ;;  %v1586_v8 = vpack.c.bf16 %v459_v2, %v455_v0  ;;  %v470_v15 = vld [vmem:[#allocation9 + $0x288] sm:$0xff]  ;;  %v472_v17 = vld [vmem:[#allocation9 + $0x298] sm:$0xff] }
 0x107   :  { %vm165_vm1 = vcmp.eq.s32.totalorder %v164_v18, %v108_v42  ;;  %v397_v42 = vld [vmem:[#allocation9 + $0x40] sm:$0xff]  ;;  %1555 = vmatpush1.bf16.msra.mxu1 %v1554_v36  ;;  %v430_v18 = vld [vmem:[#allocation9 + $0x148] sm:$0xff]  ;;  %v1574_v36 = vpack.c.bf16 %v435_v29, %v431_v27  ;;  %v480_v29 = vld [vmem:[#allocation9 + $0x2d8] sm:$0xff] }
 0x108   :  { %v1192_v20 = vsel %vm165_vm1, 1.0, %v1950_v35  ;;  %v400_v35 = vld [vmem:[#allocation9 + $0x58] sm:$0xff]  ;;  %v1430_v45 = vpack.c.bf16 %v401_v43, %v397_v42  ;;  %v443_v42 = vld [vmem:[#allocation9 + $0x1b0] sm:$0xff]  ;;  %v446_v43 = vld [vmem:[#allocation9 + $0x1c8] sm:$0xff] }
 0x109   :  { %v168_v21 = vadd.f32 %v1192_v20, %v161_v19  ;;  %v1556_v41 = vpack.c.bf16 %v404_v38, %v400_v35  ;;  %v434_v19 = vld [vmem:[#allocation9 + $0x168] sm:$0xff]  ;;  %v432_v20 = vld [vmem:[#allocation9 + $0x158] sm:$0xff]  ;;  %v437_v35 = vld [vmem:[#allocation9 + $0x180] sm:$0xff] }
 0x10a   :  { %v1444_v24 = vpack.c.bf16 %v434_v19, %v430_v18  ;;  %v441_v38 = vld [vmem:[#allocation9 + $0x1a0] sm:$0xff]  ;;  %v476_v18 = vld [vmem:[#allocation9 + $0x2b8] sm:$0xff]  ;;  %v478_v27 = vld [vmem:[#allocation9 + $0x2c8] sm:$0xff] }
 0x10b   :  { %v169_v22 = vmul.f32 %v1184_v12, %v168_v21  ;;  %1557 = vmatprep.subr.bf16.mxu1 %v1556_v41  ;;  %v1440_v12 = vpack.c.bf16 %v426_v7, %v422_v6  ;;  %v436_v21 = vld [vmem:[#allocation9 + $0x178] sm:$0xff]  ;;  %v1576_v41 = vpack.c.bf16 %v444_v33, %v440_v32  ;;  %v1450_v47 = vpack.c.bf16 %v441_v38, %v437_v35  ;;  %v483_v38 = vld [vmem:[#allocation9 + $0x2f0] sm:$0xff]  ;;  %v502_v2 = vld [vmem:[#allocation9 + $0x388] sm:$0xff] }
 0x10c   :  { %1559 = vmatpush1.bf16.msra.mxu1 %v1558_v49  ;;  %v1572_v28 = vpack.c.bf16 %v436_v21, %v432_v20  ;;  %v1452_v49 = vpack.c.bf16 %v450_v44, %v446_v43  ;;  %v468_v6 = vld [vmem:[#allocation9 + $0x278] sm:$0xff]  ;;  %v1592_v25 = vpack.c.bf16 %v476_v18, %v472_v17 }
 0x10d   :  { %170 = vadd.xlane.f32.xlu0 %v169_v22  ;;  %1339 = vmatmul.mubr.f32.vlgmr.msra.gmra.mrb[0].mxu0 %v169_v22  ;;  %v1442_v22 = vpack.c.bf16 %v425_v14, %v421_v13  ;;  %v1588_v13 = vpack.c.bf16 %v468_v6, %v464_v5  ;;  %v467_v14 = vld [vmem:[#allocation9 + $0x270] sm:$0xff]  ;;  %v492_v43 = vld [vmem:[#allocation9 + $0x338] sm:$0xff] }
 0x10e   :  { %1427 = vmatpush1.bf16.msra.mxu0 %v1426_v31  ;;  %1561 = vmatprep.subr.bf16.mxu1 %v1560_v54  ;;  %v442_v31 = vld [vmem:[#allocation9 + $0x1a8] sm:$0xff]  ;;  %v451_v54 = vld [vmem:[#allocation9 + $0x1f0] sm:$0xff]  ;;  %v508_v6 = vld [vmem:[#allocation9 + $0x3b8] sm:$0xff] }
 0x10f   :  { %1429 = vmatprep.subr.bf16.mxu0 %v1428_v39  ;;  %v1448_v37 = vpack.c.bf16 %v442_v31, %v438_v30  ;;  %v439_v39 = vld [vmem:[#allocation9 + $0x190] sm:$0xff]  ;;  %v1582_v60 = vpack.c.bf16 %v451_v54, %v447_v52  ;;  %v484_v30 = vld [vmem:[#allocation9 + $0x2f8] sm:$0xff]  ;;  %v494_v52 = vld [vmem:[#allocation9 + $0x348] sm:$0xff] }
 0x110   :  { %1563 = vmatpush1.bf16.msra.mxu1 %v1562_v62  ;;  %v1578_v48 = vpack.c.bf16 %v443_v42, %v439_v39  ;;  %v453_v62 = vld [vmem:[#allocation9 + $0x200] sm:$0xff]  ;;  %v1596_v35 = vpack.c.bf16 %v484_v30, %v480_v29  ;;  %v486_v39 = vld [vmem:[#allocation9 + $0x308] sm:$0xff]  ;;  %v488_v42 = vld [vmem:[#allocation9 + $0x318] sm:$0xff] }
 0x111   :  { %1565 = vmatprep.subr.bf16.mxu1 %v1564_v3  ;;  %v462_v3 = vld [vmem:[#allocation9 + $0x248] sm:$0xff]  ;;  %v496_v54 = vld [vmem:[#allocation9 + $0x358] sm:$0xff] }
 0x112   :  { %1431 = vmatpush1.bf16.msra.mxu0 %v1430_v45  ;;  %v448_v45 = vld [vmem:[#allocation9 + $0x1d8] sm:$0xff]  ;;  %v1460_v9 = vpack.c.bf16 %v466_v4, %v462_v3  ;;  %v506_v3 = vld [vmem:[#allocation9 + $0x3a8] sm:$0xff] }
 0x113   :  { %1433 = vmatprep.subr.bf16.mxu0 %v1432_v50  ;;  %v445_v50 = vld [vmem:[#allocation9 + $0x1c0] sm:$0xff]  ;;  %v1580_v53 = vpack.c.bf16 %v452_v46, %v448_v45  ;;  %v504_v4 = vld [vmem:[#allocation9 + $0x398] sm:$0xff]  ;;  %v1480_v5 = vpack.c.bf16 %v506_v3, %v502_v2 }
 0x114   :  { %1567 = vmatpush1.bf16.msra.mxu1 %v1566_v11  ;;  %v1454_v59 = vpack.c.bf16 %v449_v51, %v445_v50  ;;  %v465_v11 = vld [vmem:[#allocation9 + $0x260] sm:$0xff]  ;;  %v1600_v50 = vpack.c.bf16 %v492_v43, %v488_v42  ;;  %v491_v51 = vld [vmem:[#allocation9 + $0x330] sm:$0xff]  ;;  %v516_v18 = vld [vmem:[#allocation9 + $0x3f8] sm:$0xff] }
 0x115   :  { %1569 = vmatprep.subr.bf16.mxu1 %v1568_v16  ;;  %v474_v16 = vld [vmem:[#allocation9 + $0x2a8] sm:$0xff]  ;;  %v524_v30 = vld [vmem:[#allocation9 + $0x438] sm:$0xff]  ;;  %v521_v42 = vld [vmem:[#allocation9 + $0x420] sm:$0xff] }
 0x116   :  { %1435 = vmatpush1.bf16.msra.mxu0 %v1434_v58  ;;  %v460_v58 = vld [vmem:[#allocation9 + $0x238] sm:$0xff]  ;;  %v1464_v21 = vpack.c.bf16 %v474_v16, %v470_v15  ;;  %v514_v15 = vld [vmem:[#allocation9 + $0x3e8] sm:$0xff]  ;;  %v519_v43 = vld [vmem:[#allocation9 + $0x410] sm:$0xff] }
 0x117   :  { %1437 = vmatprep.subr.bf16.mxu0 %v1436_v63  ;;  %v457_v63 = vld [vmem:[#allocation9 + $0x220] sm:$0xff]  ;;  %v1584_v1 = vpack.c.bf16 %v460_v58, %v456_v57  ;;  %v512_v16 = vld [vmem:[#allocation9 + $0x3d8] sm:$0xff] }
 0x118   :  { %1571 = vmatpush1.bf16.msra.mxu1 %v1570_v23  ;;  %v1458_v7 = vpack.c.bf16 %v457_v63, %v453_v62  ;;  %v473_v23 = vld [vmem:[#allocation9 + $0x2a0] sm:$0xff]  ;;  %v495_v62 = vld [vmem:[#allocation9 + $0x350] sm:$0xff] }
 0x119   :  { %1573 = vmatprep.subr.bf16.mxu1 %v1572_v28  ;;  %v482_v28 = vld [vmem:[#allocation9 + $0x2e8] sm:$0xff]  ;;  %v499_v63 = vld [vmem:[#allocation9 + $0x370] sm:$0xff] }
 0x11a   :  { %1439 = vmatpush1.bf16.msra.mxu0 %v1438_v10  ;;  %v461_v10 = vld [vmem:[#allocation9 + $0x240] sm:$0xff]  ;;  %v1468_v33 = vpack.c.bf16 %v482_v28, %v478_v27  ;;  %v522_v27 = vld [vmem:[#allocation9 + $0x428] sm:$0xff]  ;;  %v520_v28 = vld [vmem:[#allocation9 + $0x418] sm:$0xff] }
 0x11b   :  { %1441 = vmatprep.subr.bf16.mxu0 %v1440_v12  ;;  %v463_v12 = vld [vmem:[#allocation9 + $0x250] sm:$0xff]  ;;  %v1462_v19 = vpack.c.bf16 %v465_v11, %v461_v10 }
 0x11c   :  { %1575 = vmatpush1.bf16.msra.mxu1 %v1574_v36  ;;  %v1590_v20 = vpack.c.bf16 %v467_v14, %v463_v12  ;;  %v481_v36 = vld [vmem:[#allocation9 + $0x2e0] sm:$0xff]  ;;  %v503_v11 = vld [vmem:[#allocation9 + $0x390] sm:$0xff]  ;;  %v510_v14 = vld [vmem:[#allocation9 + $0x3c8] sm:$0xff] }
 0x11d   :  { %1577 = vmatprep.subr.bf16.mxu1 %v1576_v41  ;;  %v490_v41 = vld [vmem:[#allocation9 + $0x328] sm:$0xff]  ;;  %v507_v12 = vld [vmem:[#allocation9 + $0x3b0] sm:$0xff]  ;;  %v1484_v17 = vpack.c.bf16 %v514_v15, %v510_v14  ;;  %v548_v14 = vld [vmem:[#allocation9 + $0x4f8] sm:$0xff] }
 0x11e   :  { %1443 = vmatpush1.bf16.msra.mxu0 %v1442_v22  ;;  %v469_v22 = vld [vmem:[#allocation9 + $0x280] sm:$0xff]  ;;  %v1472_v46 = vpack.c.bf16 %v490_v41, %v486_v39 }
 0x11f   :  { %1445 = vmatprep.subr.bf16.mxu0 %v1444_v24  ;;  %v471_v24 = vld [vmem:[#allocation9 + $0x290] sm:$0xff]  ;;  %v1466_v31 = vpack.c.bf16 %v473_v23, %v469_v22  ;;  %v517_v41 = vld [vmem:[#allocation9 + $0x400] sm:$0xff] }
 0x120   :  { %1579 = vmatpush1.bf16.msra.mxu1 %v1578_v48  ;;  %v1594_v32 = vpack.c.bf16 %v475_v26, %v471_v24  ;;  %v489_v48 = vld [vmem:[#allocation9 + $0x320] sm:$0xff]  ;;  %v511_v23 = vld [vmem:[#allocation9 + $0x3d0] sm:$0xff]  ;;  %v518_v26 = vld [vmem:[#allocation9 + $0x408] sm:$0xff] }
 0x121   :  { %1581 = vmatprep.subr.bf16.mxu1 %v1580_v53  ;;  %v498_v53 = vld [vmem:[#allocation9 + $0x368] sm:$0xff]  ;;  %v515_v24 = vld [vmem:[#allocation9 + $0x3f0] sm:$0xff]  ;;  %v1488_v29 = vpack.c.bf16 %v522_v27, %v518_v26  ;;  %v556_v26 = vld [vmem:[#allocation9 + $0x538] sm:$0xff] }
 0x122   :  { %1447 = vmatpush1.bf16.msra.mxu0 %v1446_v34  ;;  %v477_v34 = vld [vmem:[#allocation9 + $0x2c0] sm:$0xff]  ;;  %v1476_v58 = vpack.c.bf16 %v498_v53, %v494_v52 }
 0x123   :  { %1449 = vmatprep.subr.bf16.mxu0 %v1448_v37  ;;  %v479_v37 = vld [vmem:[#allocation9 + $0x2d0] sm:$0xff]  ;;  %v1470_v44 = vpack.c.bf16 %v481_v36, %v477_v34  ;;  %v525_v53 = vld [vmem:[#allocation9 + $0x440] sm:$0xff] }
 0x124   :  { %1583 = vmatpush1.bf16.msra.mxu1 %v1582_v60  ;;  %v1598_v45 = vpack.c.bf16 %v483_v38, %v479_v37  ;;  %v497_v60 = vld [vmem:[#allocation9 + $0x360] sm:$0xff] }
 0x125   :  { %1585 = vmatprep.subr.bf16.mxu1 %v1584_v1  ;;  %v1606_v1 = vpack.c.bf16 %v499_v63, %v495_v62  ;;  %v538_v62 = vld [vmem:[#allocation9 + $0x4a8] sm:$0xff]  ;;  %v536_v63 = vld [vmem:[#allocation9 + $0x498] sm:$0xff] }
 0x126   :  { %1451 = vmatpush1.bf16.msra.mxu0 %v1450_v47  ;;  %v485_v47 = vld [vmem:[#allocation9 + $0x300] sm:$0xff] }
 0x127   :  { %1453 = vmatprep.subr.bf16.mxu0 %v1452_v49  ;;  %v487_v49 = vld [vmem:[#allocation9 + $0x310] sm:$0xff]  ;;  %v1474_v56 = vpack.c.bf16 %v489_v48, %v485_v47  ;;  %v528_v47 = vld [vmem:[#allocation9 + $0x458] sm:$0xff] }
 0x128   :  { %1587 = vmatpush1.bf16.msra.mxu1 %v1586_v8  ;;  %v1602_v57 = vpack.c.bf16 %v491_v51, %v487_v49  ;;  %v505_v8 = vld [vmem:[#allocation9 + $0x3a0] sm:$0xff]  ;;  %v532_v48 = vld [vmem:[#allocation9 + $0x478] sm:$0xff]  ;;  %v1490_v51 = vpack.c.bf16 %v521_v42, %v517_v41 }
 0x129   :  { %1589 = vmatprep.subr.bf16.mxu1 %v1588_v13  ;;  %v1610_v13 = vpack.c.bf16 %v507_v12, %v503_v11  ;;  %v542_v11 = vld [vmem:[#allocation9 + $0x4c8] sm:$0xff] }
 0x12a   :  { %1455 = vmatpush1.bf16.msra.mxu0 %v1454_v59  ;;  %v493_v59 = vld [vmem:[#allocation9 + $0x340] sm:$0xff]  ;;  %v546_v12 = vld [vmem:[#allocation9 + $0x4e8] sm:$0xff] }
 0x12b   :  { %1457 = vmatprep.subr.bf16.mxu0 %v1456_v61  ;;  %v1604_v61 = vpack.c.bf16 %v500_v55, %v496_v54  ;;  %v1478_v0 = vpack.c.bf16 %v497_v60, %v493_v59  ;;  %v529_v54 = vld [vmem:[#allocation9 + $0x460] sm:$0xff]  ;;  %v534_v59 = vld [vmem:[#allocation9 + $0x488] sm:$0xff] }
 0x12c   :  { %1591 = vmatpush1.bf16.msra.mxu1 %v1590_v20  ;;  %v513_v20 = vld [vmem:[#allocation9 + $0x3e0] sm:$0xff]  ;;  %v1494_v3 = vpack.c.bf16 %v529_v54, %v525_v53 }
 0x12d   :  { %1593 = vmatprep.subr.bf16.mxu1 %v1592_v25  ;;  %v1614_v25 = vpack.c.bf16 %v515_v24, %v511_v23  ;;  %v550_v23 = vld [vmem:[#allocation9 + $0x508] sm:$0xff] }
 0x12e   :  { %1459 = vmatpush1.bf16.msra.mxu0 %v1458_v7  ;;  %v501_v7 = vld [vmem:[#allocation9 + $0x380] sm:$0xff]  ;;  %v554_v24 = vld [vmem:[#allocation9 + $0x528] sm:$0xff] }
 0x12f   :  { %1461 = vmatprep.subr.bf16.mxu0 %v1460_v9  ;;  %v1608_v9 = vpack.c.bf16 %v508_v6, %v504_v4  ;;  %v1482_v10 = vpack.c.bf16 %v505_v8, %v501_v7  ;;  %v537_v6 = vld [vmem:[#allocation9 + $0x4a0] sm:$0xff]  ;;  %v1496_v7 = vpack.c.bf16 %v538_v62, %v534_v59  ;;  %v574_v62 = vld [vmem:[#allocation9 + $0x5c8] sm:$0xff] }
 0x130   :  { %1595 = vmatpush1.bf16.msra.mxu1 %v1594_v32 }
 0x131   :  { %1597 = vmatprep.subr.bf16.mxu1 %v1596_v35 }
 0x132   :  { %1463 = vmatpush1.bf16.msra.mxu0 %v1462_v19  ;;  %v509_v19 = vld [vmem:[#allocation9 + $0x3c0] sm:$0xff] }
 0x133   :  { %1465 = vmatprep.subr.bf16.mxu0 %v1464_v21  ;;  %v1612_v21 = vpack.c.bf16 %v516_v18, %v512_v16  ;;  %v1486_v22 = vpack.c.bf16 %v513_v20, %v509_v19  ;;  %v545_v18 = vld [vmem:[#allocation9 + $0x4e0] sm:$0xff]  ;;  %v1500_v19 = vpack.c.bf16 %v546_v12, %v542_v11  ;;  %v582_v11 = vld [vmem:[#allocation9 + $0x608] sm:$0xff] }
 0x134   :  { %1599 = vmatpush1.bf16.msra.mxu1 %v1598_v45  ;;  %v526_v45 = vld [vmem:[#allocation9 + $0x448] sm:$0xff] }
 0x135   :  { %1601 = vmatprep.subr.bf16.mxu1 %v1600_v50  ;;  %v586_v12 = vld [vmem:[#allocation9 + $0x628] sm:$0xff] }
 0x136   :  { %1467 = vmatpush1.bf16.msra.mxu0 %v1466_v31  ;;  %v1616_v31 = vpack.c.bf16 %v524_v30, %v520_v28  ;;  %v553_v30 = vld [vmem:[#allocation9 + $0x520] sm:$0xff] }
 0x137   :  { %1469 = vmatprep.subr.bf16.mxu0 %v1468_v33 }
 0x138   :  { %1603 = vmatpush1.bf16.msra.mxu1 %v1602_v57  ;;  %v527_v57 = vld [vmem:[#allocation9 + $0x450] sm:$0xff] }
 0x139   :  { %1605 = vmatprep.subr.bf16.mxu1 %v1604_v61  ;;  %v1620_v61 = vpack.c.bf16 %v532_v48, %v528_v47  ;;  %v559_v47 = vld [vmem:[#allocation9 + $0x550] sm:$0xff] }
 0x13a   :  { %1471 = vmatpush1.bf16.msra.mxu0 %v1470_v44  ;;  %v523_v44 = vld [vmem:[#allocation9 + $0x430] sm:$0xff] }
 0x13b   :  { %1473 = vmatprep.subr.bf16.mxu0 %v1472_v46  ;;  %v530_v46 = vld [vmem:[#allocation9 + $0x468] sm:$0xff]  ;;  %v1618_v52 = vpack.c.bf16 %v523_v44, %v519_v43  ;;  %v557_v43 = vld [vmem:[#allocation9 + $0x540] sm:$0xff]  ;;  %v563_v48 = vld [vmem:[#allocation9 + $0x570] sm:$0xff] }
 0x13c   :  { %1607 = vmatpush1.bf16.msra.mxu1 %v1606_v1  ;;  %v1492_v60 = vpack.c.bf16 %v530_v46, %v526_v45  ;;  %v561_v44 = vld [vmem:[#allocation9 + $0x560] sm:$0xff]  ;;  %v1638_v54 = vpack.c.bf16 %v563_v48, %v559_v47  ;;  %v599_v47 = vld [vmem:[#allocation9 + $0x690] sm:$0xff] }
 0x13d   :  { %1609 = vmatprep.subr.bf16.mxu1 %v1608_v9  ;;  %v535_v9 = vld [vmem:[#allocation9 + $0x490] sm:$0xff]  ;;  %v1510_v53 = vpack.c.bf16 %v561_v44, %v557_v43  ;;  %v597_v43 = vld [vmem:[#allocation9 + $0x680] sm:$0xff] }
 0x13e   :  { %1475 = vmatpush1.bf16.msra.mxu0 %v1474_v56  ;;  %v601_v44 = vld [vmem:[#allocation9 + $0x6a0] sm:$0xff]  ;;  %v603_v48 = vld [vmem:[#allocation9 + $0x6b0] sm:$0xff] }
 0x13f   :  { %1477 = vmatprep.subr.bf16.mxu0 %v1476_v58  ;;  %v531_v58 = vld [vmem:[#allocation9 + $0x470] sm:$0xff] }
 0x140   :  { %1611 = vmatpush1.bf16.msra.mxu1 %v1610_v13  ;;  %v1622_v4 = vpack.c.bf16 %v531_v58, %v527_v57  ;;  %v544_v13 = vld [vmem:[#allocation9 + $0x4d8] sm:$0xff]  ;;  %v569_v57 = vld [vmem:[#allocation9 + $0x5a0] sm:$0xff] }
 0x141   :  { %1613 = vmatprep.subr.bf16.mxu1 %v1612_v21  ;;  %v1628_v20 = vpack.c.bf16 %v548_v14, %v544_v13  ;;  %v543_v21 = vld [vmem:[#allocation9 + $0x4d0] sm:$0xff]  ;;  %v584_v13 = vld [vmem:[#allocation9 + $0x618] sm:$0xff] }
 0x142   :  { %1479 = vmatpush1.bf16.msra.mxu0 %v1478_v0  ;;  %v540_v0 = vld [vmem:[#allocation9 + $0x4b8] sm:$0xff] }
 0x143   :  { %1481 = vmatprep.subr.bf16.mxu0 %v1480_v5  ;;  %v533_v5 = vld [vmem:[#allocation9 + $0x480] sm:$0xff]  ;;  %v1624_v8 = vpack.c.bf16 %v540_v0, %v536_v63  ;;  %v578_v63 = vld [vmem:[#allocation9 + $0x5e8] sm:$0xff]  ;;  %v576_v0 = vld [vmem:[#allocation9 + $0x5d8] sm:$0xff] }
 0x144   :  { %1615 = vmatpush1.bf16.msra.mxu1 %v1614_v25  ;;  %v1498_v15 = vpack.c.bf16 %v537_v6, %v533_v5  ;;  %v552_v25 = vld [vmem:[#allocation9 + $0x518] sm:$0xff]  ;;  %v573_v5 = vld [vmem:[#allocation9 + $0x5c0] sm:$0xff] }
 0x145   :  { %1617 = vmatprep.subr.bf16.mxu1 %v1616_v31  ;;  %v1504_v31 = vpack.c.bf16 %v554_v24, %v550_v23  ;;  %v577_v6 = vld [vmem:[#allocation9 + $0x5e0] sm:$0xff]  ;;  %v588_v14 = vld [vmem:[#allocation9 + $0x638] sm:$0xff]  ;;  %v590_v23 = vld [vmem:[#allocation9 + $0x648] sm:$0xff] }
 0x146   :  { %1483 = vmatpush1.bf16.msra.mxu0 %v1482_v10  ;;  %v539_v10 = vld [vmem:[#allocation9 + $0x4b0] sm:$0xff]  ;;  %v594_v24 = vld [vmem:[#allocation9 + $0x668] sm:$0xff] }
 0x147   :  { %1485 = vmatprep.subr.bf16.mxu0 %v1484_v17  ;;  %v1626_v16 = vpack.c.bf16 %v539_v10, %v535_v9  ;;  %v541_v17 = vld [vmem:[#allocation9 + $0x4c0] sm:$0xff]  ;;  %v575_v9 = vld [vmem:[#allocation9 + $0x5d0] sm:$0xff] }
 0x148   :  { %v1502_v27 = vpack.c.bf16 %v545_v18, %v541_v17  ;;  %v579_v10 = vld [vmem:[#allocation9 + $0x5f0] sm:$0xff]  ;;  %v581_v17 = vld [vmem:[#allocation9 + $0x600] sm:$0xff] }
 0x149   :  { %v585_v18 = vld [vmem:[#allocation9 + $0x620] sm:$0xff] }
 0x14a   :  { %1487 = vmatpush1.bf16.msra.mxu0 %v1486_v22  ;;  %v547_v22 = vld [vmem:[#allocation9 + $0x4f0] sm:$0xff] }
 0x14b   :  { %1489 = vmatprep.subr.bf16.mxu0 %v1488_v29  ;;  %v1630_v28 = vpack.c.bf16 %v547_v22, %v543_v21  ;;  %v549_v29 = vld [vmem:[#allocation9 + $0x500] sm:$0xff]  ;;  %v583_v21 = vld [vmem:[#allocation9 + $0x610] sm:$0xff] }
 0x14c   :  { %v1506_v41 = vpack.c.bf16 %v553_v30, %v549_v29  ;;  %v587_v22 = vld [vmem:[#allocation9 + $0x630] sm:$0xff]  ;;  %v589_v29 = vld [vmem:[#allocation9 + $0x640] sm:$0xff] }
 0x14d   :  { %v593_v30 = vld [vmem:[#allocation9 + $0x660] sm:$0xff] }
 0x193   :  { %v304_v32 = vpop.xlane.xlu1 %303 }
 0x194   :  { %v375_v33 = vmax.f32 %v304_v32, 1e-09  ;;  %v1632_v32 = vpack.c.bf16 %v556_v26, %v552_v25  ;;  %v592_v25 = vld [vmem:[#allocation9 + $0x658] sm:$0xff] }
 0x195   :  { %v596_v26 = vld [vmem:[#allocation9 + $0x678] sm:$0xff] }
 0x196   :  { %1787 = vrcp.f32 %v375_v33  ;;  %v551_v33 = vld [vmem:[#allocation9 + $0x510] sm:$0xff] }
 0x19a   :  { %v171_v34 = vpop.xlane.xlu0 %170 }
 0x19b   :  { %v242_v36 = vmax.f32 %v171_v34, 1e-09  ;;  %v555_v34 = vld [vmem:[#allocation9 + $0x530] sm:$0xff] }
 0x19c   :  { %v1634_v42 = vpack.c.bf16 %v555_v34, %v551_v33  ;;  %v591_v33 = vld [vmem:[#allocation9 + $0x650] sm:$0xff] }
 0x19d   :  { %1789 = vrcp.f32 %v242_v36  ;;  %v558_v36 = vld [vmem:[#allocation9 + $0x548] sm:$0xff]  ;;  %v595_v34 = vld [vmem:[#allocation9 + $0x670] sm:$0xff] }
 0x1a0   :  { %v1788_v37 = vpop.eup %1787 }
 0x1a7   :  { %v1790_v49 = vpop.eup %1789 }
 0x1d9   :  { %v371_v35 = vpop.f32.mrb[0].mxu1 }
 0x1da   :  { %v2122_v38 = vmul.f32 %v1788_v37, %v371_v35  ;;  %v1375_v39 = vpop.f32.mrb[1].mxu1  ;;  %v562_v37 = vld [vmem:[#allocation9 + $0x568] sm:$0xff]  ;;  %v560_v35 = vld [vmem:[#allocation9 + $0x558] sm:$0xff] }
 0x1db   :  { %v564_v39 = vld [vmem:[#allocation9 + $0x578] sm:$0xff]  ;;  %v1508_v45 = vpack.c.bf16 %v562_v37, %v558_v36  ;;  %v598_v36 = vld [vmem:[#allocation9 + $0x688] sm:$0xff] }
 0x1dc   :  { %731 = vmatprep.mubr.f32.mxu0 %v2122_v38  ;;  %873 = vmatprep.mubr.f32.mxu1 %v2122_v38  ;;  %v1636_v46 = vpack.c.bf16 %v564_v39, %v560_v35  ;;  %v602_v37 = vld [vmem:[#allocation9 + $0x6a8] sm:$0xff]  ;;  %v600_v35 = vld [vmem:[#allocation9 + $0x698] sm:$0xff] }
 0x1dd   :  { %v604_v39 = vld [vmem:[#allocation9 + $0x6b8] sm:$0xff] }
 0x1e0   :  { %v238_v50 = vpop.f32.mrb[0].mxu0 }
 0x1e1   :  { %v2126_v55 = vmul.f32 %v1790_v49, %v238_v50  ;;  %v1340_v56 = vpop.f32.mrb[1].mxu0  ;;  %v566_v49 = vld [vmem:[#allocation9 + $0x588] sm:$0xff] }
 0x1e2   :  { %v570_v50 = vld [vmem:[#allocation9 + $0x5a8] sm:$0xff]  ;;  %v565_v56 = vld [vmem:[#allocation9 + $0x580] sm:$0xff] }
 0x1e3   :  { %732 = vmatmul.mubr.f32.vlgmr.msra.gmra.mrb[2].mxu0 %v2126_v55  ;;  %874 = vmatmul.mubr.f32.vlgmr.msra.gmra.mrb[2].mxu1 %v2126_v55  ;;  %v383_v1 = vmul.f32 %v2122_v38, %v2126_v55  ;;  %v380_v2 = vsub.f32 %v2126_v55, %v2122_v38  ;;  %v1512_v58 = vpack.c.bf16 %v570_v50, %v566_v49  ;;  %v606_v49 = vld [vmem:[#allocation9 + $0x6c8] sm:$0xff] }
 0x1e4   :  { %1491 = vmatpush1.bf16.msra.mxu0 %v1490_v51  ;;  %1619 = vmatpush1.bf16.msra.mxu1 %v1618_v52  ;;  %v568_v51 = vld [vmem:[#allocation9 + $0x598] sm:$0xff]  ;;  %v610_v50 = vld [vmem:[#allocation9 + $0x6e8] sm:$0xff] }
 0x1e5   :  { %802 = vmatprep.mubr.f32.mxu0 %v383_v1  ;;  %944 = vmatprep.mubr.f32.mxu1 %v383_v1  ;;  %v572_v52 = vld [vmem:[#allocation9 + $0x5b8] sm:$0xff] }
 0x1e6   :  { %1493 = vmatprep.subr.bf16.mxu0 %v1492_v60  ;;  %1621 = vmatprep.subr.bf16.mxu1 %v1620_v61  ;;  %v1640_v59 = vpack.c.bf16 %v572_v52, %v568_v51  ;;  %v567_v60 = vld [vmem:[#allocation9 + $0x590] sm:$0xff]  ;;  %v580_v1 = vld [vmem:[#allocation9 + $0x5f8] sm:$0xff] }
 0x1e7   :  { %v571_v61 = vld [vmem:[#allocation9 + $0x5b0] sm:$0xff]  ;;  %v608_v51 = vld [vmem:[#allocation9 + $0x6d8] sm:$0xff] }
 0x1e8   :  { %1495 = vmatpush1.bf16.msra.mxu0 %v1494_v3  ;;  %1623 = vmatpush1.bf16.msra.mxu1 %v1622_v4  ;;  %v1514_v3 = vpack.c.bf16 %v569_v57, %v565_v56  ;;  %v1642_v4 = vpack.c.bf16 %v571_v61, %v567_v60  ;;  %v612_v52 = vld [vmem:[#allocation9 + $0x6f8] sm:$0xff]  ;;  %v605_v56 = vld [vmem:[#allocation9 + $0x6c0] sm:$0xff]  ;;  %v607_v60 = vld [vmem:[#allocation9 + $0x6d0] sm:$0xff] }
 0x1e9   :  { %1497 = vmatprep.subr.bf16.mxu0 %v1496_v7  ;;  %1625 = vmatprep.subr.bf16.mxu1 %v1624_v8  ;;  %v1516_v7 = vpack.c.bf16 %v578_v63, %v574_v62  ;;  %v1644_v8 = vpack.c.bf16 %v580_v1, %v576_v0  ;;  %v609_v57 = vld [vmem:[#allocation9 + $0x6e0] sm:$0xff]  ;;  %v611_v61 = vld [vmem:[#allocation9 + $0x6f0] sm:$0xff]  ;;  %v614_v62 = vld [vmem:[#allocation9 + $0x708] sm:$0xff] }
 0x1ea   :  { %v618_v63 = vld [vmem:[#allocation9 + $0x728] sm:$0xff]  ;;  %v616_v0 = vld [vmem:[#allocation9 + $0x718] sm:$0xff] }
 0x1eb   :  { %v620_v1 = vld [vmem:[#allocation9 + $0x738] sm:$0xff] }
 0x1ec   :  { %1499 = vmatpush1.bf16.msra.mxu0 %v1498_v15  ;;  %1627 = vmatpush1.bf16.msra.mxu1 %v1626_v16  ;;  %v1518_v15 = vpack.c.bf16 %v577_v6, %v573_v5  ;;  %v1646_v16 = vpack.c.bf16 %v579_v10, %v575_v9  ;;  %v613_v5 = vld [vmem:[#allocation9 + $0x700] sm:$0xff]  ;;  %v615_v9 = vld [vmem:[#allocation9 + $0x710] sm:$0xff] }
 0x1ed   :  { %1501 = vmatprep.subr.bf16.mxu0 %v1500_v19  ;;  %1629 = vmatprep.subr.bf16.mxu1 %v1628_v20  ;;  %v1520_v19 = vpack.c.bf16 %v586_v12, %v582_v11  ;;  %v1648_v20 = vpack.c.bf16 %v588_v14, %v584_v13  ;;  %v617_v6 = vld [vmem:[#allocation9 + $0x720] sm:$0xff]  ;;  %v619_v10 = vld [vmem:[#allocation9 + $0x730] sm:$0xff]  ;;  %v622_v11 = vld [vmem:[#allocation9 + $0x748] sm:$0xff] }
 0x1ee   :  { %v626_v12 = vld [vmem:[#allocation9 + $0x768] sm:$0xff]  ;;  %v624_v13 = vld [vmem:[#allocation9 + $0x758] sm:$0xff] }
 0x1ef   :  { %v628_v14 = vld [vmem:[#allocation9 + $0x778] sm:$0xff] }
 0x1f0   :  { %1503 = vmatpush1.bf16.msra.mxu0 %v1502_v27  ;;  %1631 = vmatpush1.bf16.msra.mxu1 %v1630_v28  ;;  %v1522_v27 = vpack.c.bf16 %v585_v18, %v581_v17  ;;  %v1650_v28 = vpack.c.bf16 %v587_v22, %v583_v21  ;;  %v621_v17 = vld [vmem:[#allocation9 + $0x740] sm:$0xff]  ;;  %v623_v21 = vld [vmem:[#allocation9 + $0x750] sm:$0xff] }
 0x1f1   :  { %1505 = vmatprep.subr.bf16.mxu0 %v1504_v31  ;;  %1633 = vmatprep.subr.bf16.mxu1 %v1632_v32  ;;  %v1524_v31 = vpack.c.bf16 %v594_v24, %v590_v23  ;;  %v1652_v32 = vpack.c.bf16 %v596_v26, %v592_v25  ;;  %v625_v18 = vld [vmem:[#allocation9 + $0x760] sm:$0xff]  ;;  %v627_v22 = vld [vmem:[#allocation9 + $0x770] sm:$0xff]  ;;  %v630_v23 = vld [vmem:[#allocation9 + $0x788] sm:$0xff] }
 0x1f2   :  { %v634_v24 = vld [vmem:[#allocation9 + $0x7a8] sm:$0xff]  ;;  %v632_v25 = vld [vmem:[#allocation9 + $0x798] sm:$0xff] }
 0x1f3   :  { %v636_v26 = vld [vmem:[#allocation9 + $0x7b8] sm:$0xff] }
 0x1f4   :  { %1507 = vmatpush1.bf16.msra.mxu0 %v1506_v41  ;;  %1635 = vmatpush1.bf16.msra.mxu1 %v1634_v42  ;;  %v1526_v41 = vpack.c.bf16 %v593_v30, %v589_v29  ;;  %v1654_v42 = vpack.c.bf16 %v595_v34, %v591_v33  ;;  %v629_v29 = vld [vmem:[#allocation9 + $0x780] sm:$0xff]  ;;  %v631_v33 = vld [vmem:[#allocation9 + $0x790] sm:$0xff] }
 0x1f5   :  { %1509 = vmatprep.subr.bf16.mxu0 %v1508_v45  ;;  %1637 = vmatprep.subr.bf16.mxu1 %v1636_v46  ;;  %v1528_v45 = vpack.c.bf16 %v602_v37, %v598_v36  ;;  %v1656_v46 = vpack.c.bf16 %v604_v39, %v600_v35  ;;  %v633_v30 = vld [vmem:[#allocation9 + $0x7a0] sm:$0xff]  ;;  %v635_v34 = vld [vmem:[#allocation9 + $0x7b0] sm:$0xff]  ;;  %v638_v36 = vld [vmem:[#allocation9 + $0x7c8] sm:$0xff] }
 0x1f6   :  { %v642_v37 = vld [vmem:[#allocation9 + $0x7e8] sm:$0xff]  ;;  %v640_v35 = vld [vmem:[#allocation9 + $0x7d8] sm:$0xff] }
 0x1f7   :  { %v644_v39 = vld [vmem:[#allocation9 + $0x7f8] sm:$0xff] }
 0x1f8   :  { %1511 = vmatpush1.bf16.msra.mxu0 %v1510_v53  ;;  %1639 = vmatpush1.bf16.msra.mxu1 %v1638_v54  ;;  %v1530_v53 = vpack.c.bf16 %v601_v44, %v597_v43  ;;  %v1658_v54 = vpack.c.bf16 %v603_v48, %v599_v47  ;;  %v637_v43 = vld [vmem:[#allocation9 + $0x7c0] sm:$0xff]  ;;  %v639_v47 = vld [vmem:[#allocation9 + $0x7d0] sm:$0xff] }
 0x1f9   :  { %1513 = vmatprep.subr.bf16.mxu0 %v1512_v58  ;;  %1641 = vmatprep.subr.bf16.mxu1 %v1640_v59  ;;  %v1532_v58 = vpack.c.bf16 %v610_v50, %v606_v49  ;;  %v1660_v59 = vpack.c.bf16 %v612_v52, %v608_v51  ;;  %v641_v44 = vld [vmem:[#allocation9 + $0x7e0] sm:$0xff]  ;;  %v643_v48 = vld [vmem:[#allocation9 + $0x7f0] sm:$0xff]  ;;  %v972_v50 = vld [vmem:[#allocation11 + $0x88] sm:$0xff] }
 0x1fa   :  { %v971_v49 = vld [vmem:[#allocation11 + $0x80] sm:$0xff]  ;;  %v1004_v52 = vld [vmem:[#allocation11 + $0x188] sm:$0xff] }
 0x1fb   :  { %v1003_v51 = vld [vmem:[#allocation11 + $0x180] sm:$0xff] }
 0x1fc   :  { %1515 = vmatpush1.bf16.msra.mxu0 %v1514_v3  ;;  %1643 = vmatpush1.bf16.msra.mxu1 %v1642_v4  ;;  %v1534_v3 = vpack.c.bf16 %v609_v57, %v605_v56  ;;  %v1662_v4 = vpack.c.bf16 %v611_v61, %v607_v60  ;;  %v955_v56 = vld [vmem:[#allocation11] sm:$0xff]  ;;  %v956_v57 = vld [vmem:[#allocation11 + $0x8] sm:$0xff] }
 0x1fd   :  { %1517 = vmatprep.subr.bf16.mxu0 %v1516_v7  ;;  %1645 = vmatprep.subr.bf16.mxu1 %v1644_v8  ;;  %v1536_v7 = vpack.c.bf16 %v618_v63, %v614_v62  ;;  %v1664_v8 = vpack.c.bf16 %v620_v1, %v616_v0  ;;  %v987_v60 = vld [vmem:[#allocation11 + $0x100] sm:$0xff]  ;;  %v988_v61 = vld [vmem:[#allocation11 + $0x108] sm:$0xff]  ;;  %v973_v62 = vld [vmem:[#allocation11 + $0x90] sm:$0xff] }
 0x1fe   :  { %v974_v63 = vld [vmem:[#allocation11 + $0x98] sm:$0xff]  ;;  %v1005_v0 = vld [vmem:[#allocation11 + $0x190] sm:$0xff] }
 0x1ff   :  { %v1006_v1 = vld [vmem:[#allocation11 + $0x198] sm:$0xff] }
 0x200   :  { %1519 = vmatpush1.bf16.msra.mxu0 %v1518_v15  ;;  %1647 = vmatpush1.bf16.msra.mxu1 %v1646_v16  ;;  %v1538_v15 = vpack.c.bf16 %v617_v6, %v613_v5  ;;  %v1666_v16 = vpack.c.bf16 %v619_v10, %v615_v9  ;;  %v957_v5 = vld [vmem:[#allocation11 + $0x10] sm:$0xff]  ;;  %v958_v6 = vld [vmem:[#allocation11 + $0x18] sm:$0xff]  ;;  %v1716_v9 = vpack.c.bf16 %v1006_v1, %v1005_v0 }
 0x201   :  { %1521 = vmatprep.subr.bf16.mxu0 %v1520_v19  ;;  %1649 = vmatprep.subr.bf16.mxu1 %v1648_v20  ;;  %v1540_v19 = vpack.c.bf16 %v626_v12, %v622_v11  ;;  %v1668_v20 = vpack.c.bf16 %v628_v14, %v624_v13  ;;  %v989_v10 = vld [vmem:[#allocation11 + $0x110] sm:$0xff]  ;;  %v990_v11 = vld [vmem:[#allocation11 + $0x118] sm:$0xff]  ;;  %v975_v12 = vld [vmem:[#allocation11 + $0xa0] sm:$0xff] }
 0x202   :  { %v976_v13 = vld [vmem:[#allocation11 + $0xa8] sm:$0xff]  ;;  %v1007_v14 = vld [vmem:[#allocation11 + $0x1a0] sm:$0xff] }
 0x203   :  { %v1688_v38 = vpack.c.bf16 %v976_v13, %v975_v12  ;;  %v986_v12 = vld [vmem:[#allocation11 + $0xf8] sm:$0xff]  ;;  %v1017_v13 = vld [vmem:[#allocation11 + $0x1f0] sm:$0xff] }
 0x204   :  { %1523 = vmatpush1.bf16.msra.mxu0 %v1522_v27  ;;  %1651 = vmatpush1.bf16.msra.mxu1 %v1650_v28  ;;  %v1542_v27 = vpack.c.bf16 %v625_v18, %v621_v17  ;;  %v1670_v28 = vpack.c.bf16 %v627_v22, %v623_v21  ;;  %v1718_v17 = vpack.c.bf16 %v990_v11, %v989_v10  ;;  %v959_v18 = vld [vmem:[#allocation11 + $0x20] sm:$0xff]  ;;  %v977_v21 = vld [vmem:[#allocation11 + $0xb0] sm:$0xff]  ;;  %v978_v22 = vld [vmem:[#allocation11 + $0xb8] sm:$0xff] }
 0x205   :  { %1525 = vmatprep.subr.bf16.mxu0 %v1524_v31  ;;  %1653 = vmatprep.subr.bf16.mxu1 %v1652_v32  ;;  %v1544_v31 = vpack.c.bf16 %v634_v24, %v630_v23  ;;  %v1672_v32 = vpack.c.bf16 %v636_v26, %v632_v25  ;;  %v1009_v23 = vld [vmem:[#allocation11 + $0x1b0] sm:$0xff]  ;;  %v1010_v24 = vld [vmem:[#allocation11 + $0x1b8] sm:$0xff] }
 0x206   :  { %v985_v11 = vld [vmem:[#allocation11 + $0xf0] sm:$0xff] }
 0x208   :  { %1527 = vmatpush1.bf16.msra.mxu0 %v1526_v41  ;;  %1655 = vmatpush1.bf16.msra.mxu1 %v1654_v42  ;;  %v1546_v41 = vpack.c.bf16 %v633_v30, %v629_v29  ;;  %v1674_v42 = vpack.c.bf16 %v635_v34, %v631_v33  ;;  %v1692_v29 = vpack.c.bf16 %v978_v22, %v977_v21  ;;  %v979_v33 = vld [vmem:[#allocation11 + $0xc0] sm:$0xff]  ;;  %v980_v34 = vld [vmem:[#allocation11 + $0xc8] sm:$0xff] }
 0x209   :  { %1529 = vmatprep.subr.bf16.mxu0 %v1528_v45  ;;  %1657 = vmatprep.subr.bf16.mxu1 %v1656_v46  ;;  %v1548_v45 = vpack.c.bf16 %v642_v37, %v638_v36  ;;  %v1676_v46 = vpack.c.bf16 %v644_v39, %v640_v35  ;;  %v1724_v30 = vpack.c.bf16 %v1010_v24, %v1009_v23  ;;  %v1011_v36 = vld [vmem:[#allocation11 + $0x1c0] sm:$0xff]  ;;  %v1012_v37 = vld [vmem:[#allocation11 + $0x1c8] sm:$0xff]  ;;  %v645_v23 = vld [vmem:[%s2160_s4] sm:$0xf] }
 0x20c   :  { %1531 = vmatpush1.bf16.msra.mxu0 %v1530_v53  ;;  %1659 = vmatpush1.bf16.msra.mxu1 %v1658_v54  ;;  %v1550_v53 = vpack.c.bf16 %v641_v44, %v637_v43  ;;  %v1678_v54 = vpack.c.bf16 %v643_v48, %v639_v47  ;;  %v1696_v43 = vpack.c.bf16 %v980_v34, %v979_v33  ;;  %v981_v47 = vld [vmem:[#allocation11 + $0xd0] sm:$0xff]  ;;  %v982_v48 = vld [vmem:[#allocation11 + $0xd8] sm:$0xff] }
 0x20d   :  { %1533 = vmatprep.subr.bf16.mxu0 %v1532_v58  ;;  %1661 = vmatprep.subr.bf16.mxu1 %v1660_v59  ;;  %v1680_v58 = vpack.c.bf16 %v972_v50, %v971_v49  ;;  %v1712_v59 = vpack.c.bf16 %v1004_v52, %v1003_v51  ;;  %v1728_v44 = vpack.c.bf16 %v1012_v37, %v1011_v36  ;;  %v1013_v49 = vld [vmem:[#allocation11 + $0x1d0] sm:$0xff]  ;;  %v1014_v50 = vld [vmem:[#allocation11 + $0x1d8] sm:$0xff] }
 0x210   :  { %1535 = vmatpush1.bf16.msra.mxu0 %v1534_v3  ;;  %1663 = vmatpush1.bf16.msra.mxu1 %v1662_v4  ;;  %v1682_v3 = vpack.c.bf16 %v956_v57, %v955_v56  ;;  %v1714_v4 = vpack.c.bf16 %v988_v61, %v987_v60  ;;  %v1700_v56 = vpack.c.bf16 %v982_v48, %v981_v47  ;;  %v983_v60 = vld [vmem:[#allocation11 + $0xe0] sm:$0xff]  ;;  %v984_v61 = vld [vmem:[#allocation11 + $0xe8] sm:$0xff] }
 0x211   :  { %1537 = vmatprep.subr.bf16.mxu0 %v1536_v7  ;;  %1665 = vmatprep.subr.bf16.mxu1 %v1664_v8  ;;  %v381_v7 = vand.u32 2147483647, %v380_v2  ;;  %v1684_v8 = vpack.c.bf16 %v974_v63, %v973_v62  ;;  %v991_v2 = vld [vmem:[#allocation11 + $0x120] sm:$0xff]  ;;  %v1732_v57 = vpack.c.bf16 %v1014_v50, %v1013_v49  ;;  %v1016_v63 = vld [vmem:[#allocation11 + $0x1e8] sm:$0xff] }
 0x212   :  { %v1015_v62 = vld [vmem:[#allocation11 + $0x1e0] sm:$0xff] }
 0x214   :  { %1539 = vmatpush1.bf16.msra.mxu0 %v1538_v15  ;;  %1667 = vmatpush1.bf16.msra.mxu1 %v1666_v16  ;;  %v1008_v15 = vld [vmem:[#allocation11 + $0x1a8] sm:$0xff]  ;;  %v1686_v16 = vpack.c.bf16 %v958_v6, %v957_v5  ;;  %v967_v5 = vld [vmem:[#allocation11 + $0x60] sm:$0xff] }
 0x215   :  { %1541 = vmatprep.subr.bf16.mxu0 %v1540_v19  ;;  %1669 = vmatprep.subr.bf16.mxu1 %v1668_v20  ;;  %v960_v19 = vld [vmem:[#allocation11 + $0x28] sm:$0xff]  ;;  %v1720_v55 = vpack.c.bf16 %v1008_v15, %v1007_v14  ;;  %v1708_v14 = vpack.c.bf16 %v986_v12, %v985_v11  ;;  %v1018_v15 = vld [vmem:[#allocation11 + $0x1f8] sm:$0xff] }
 0x216   :  { %v992_v20 = vld [vmem:[#allocation11 + $0x128] sm:$0xff]  ;;  %v1690_v25 = vpack.c.bf16 %v960_v19, %v959_v18  ;;  %v1740_v18 = vpack.c.bf16 %v1018_v15, %v1017_v13 }
 0x217   :  { %v1722_v26 = vpack.c.bf16 %v992_v20, %v991_v2  ;;  %v968_v6 = vld [vmem:[#allocation11 + $0x68] sm:$0xff]  ;;  %v648_v20 = vshrl.u32 %v107_v40, 7 }
 0x218   :  { %1543 = vmatpush1.bf16.msra.mxu0 %v1542_v27  ;;  %1671 = vmatpush1.bf16.msra.mxu1 %v1670_v28  ;;  %v961_v27 = vld [vmem:[#allocation11 + $0x30] sm:$0xff]  ;;  %v962_v28 = vld [vmem:[#allocation11 + $0x38] sm:$0xff] }
 0x219   :  { %1545 = vmatprep.subr.bf16.mxu0 %v1544_v31  ;;  %1673 = vmatprep.subr.bf16.mxu1 %v1672_v32  ;;  %v993_v31 = vld [vmem:[#allocation11 + $0x130] sm:$0xff]  ;;  %v994_v32 = vld [vmem:[#allocation11 + $0x138] sm:$0xff]  ;;  %v1694_v35 = vpack.c.bf16 %v962_v28, %v961_v27  ;;  %v649_v21 = vsub.s32 0, %v648_v20  ;;  %v657_v22 = vsub.s32 2, %v648_v20  ;;  %v653_v24 = vsub.s32 1, %v648_v20 }
 0x21a   :  { %v1726_v39 = vpack.c.bf16 %v994_v32, %v993_v31 }
 0x21b   :  { %v658_v27 = vrot.slane %v645_v23, %v657_v22  ;;  %v654_v28 = vrot.slane %v645_v23, %v653_v24 }
 0x21c   :  { %1547 = vmatpush1.bf16.msra.mxu0 %v1546_v41  ;;  %1675 = vmatpush1.bf16.msra.mxu1 %v1674_v42  ;;  %v963_v41 = vld [vmem:[#allocation11 + $0x40] sm:$0xff]  ;;  %v964_v42 = vld [vmem:[#allocation11 + $0x48] sm:$0xff] }
 0x21d   :  { %1549 = vmatprep.subr.bf16.mxu0 %v1548_v45  ;;  %1677 = vmatprep.subr.bf16.mxu1 %v1676_v46  ;;  %v995_v45 = vld [vmem:[#allocation11 + $0x140] sm:$0xff]  ;;  %v996_v46 = vld [vmem:[#allocation11 + $0x148] sm:$0xff]  ;;  %v1698_v51 = vpack.c.bf16 %v964_v42, %v963_v41 }
 0x21e   :  { %v1730_v52 = vpack.c.bf16 %v996_v46, %v995_v45  ;;  %v1201_v45 = vld [vmem:[%s2162_s6] ss:$0 sm:$0xff] }
 0x220   :  { %1551 = vmatpush1.bf16.msra.mxu0 %v1550_v53  ;;  %1679 = vmatpush1.bf16.msra.mxu1 %v1678_v54  ;;  %v965_v53 = vld [vmem:[#allocation11 + $0x50] sm:$0xff]  ;;  %v966_v54 = vld [vmem:[#allocation11 + $0x58] sm:$0xff] }
 0x221   :  { %1681 = vmatprep.subr.bf16.mxu0 %v1680_v58  ;;  %1713 = vmatprep.subr.bf16.mxu1 %v1712_v59  ;;  %v997_v58 = vld [vmem:[#allocation11 + $0x150] sm:$0xff]  ;;  %v998_v59 = vld [vmem:[#allocation11 + $0x158] sm:$0xff]  ;;  %v1702_v0 = vpack.c.bf16 %v966_v54, %v965_v53 }
 0x222   :  { %v1734_v1 = vpack.c.bf16 %v998_v59, %v997_v58 }
 0x223   :  { %803 = vmatmul.mubr.f32.vlgmr.msra.gmra.mrb[2].mxu0 %v381_v7  ;;  %945 = vmatmul.mubr.f32.vlgmr.msra.gmra.mrb[2].mxu1 %v381_v7  ;;  %v999_v7 = vld [vmem:[#allocation11 + $0x160] sm:$0xff] }
 0x224   :  { %1683 = vmatpush3.bf16.msra.mxu0 %v1682_v3  ;;  %1715 = vmatpush3.bf16.msra.mxu1 %v1714_v4  ;;  %v1704_v3 = vpack.c.bf16 %v984_v61, %v983_v60  ;;  %v1736_v4 = vpack.c.bf16 %v1016_v63, %v1015_v62 }
 0x225   :  { %1685 = vmatprep.subr.bf16.mxu0 %v1684_v8  ;;  %1717 = vmatprep.subr.bf16.mxu1 %v1716_v9  ;;  %v1706_v8 = vpack.c.bf16 %v968_v6, %v967_v5  ;;  %v1000_v9 = vld [vmem:[#allocation11 + $0x168] sm:$0xff] }
 0x226   :  { %v1738_v10 = vpack.c.bf16 %v1000_v9, %v999_v7 }
 0x228   :  { %1687 = vmatpush3.bf16.msra.mxu0 %v1686_v16  ;;  %1719 = vmatpush3.bf16.msra.mxu1 %v1718_v17  ;;  %v969_v16 = vld [vmem:[#allocation11 + $0x70] sm:$0xff]  ;;  %v970_v17 = vld [vmem:[#allocation11 + $0x78] sm:$0xff] }
 0x229   :  { %1689 = vmatprep.subr.bf16.mxu0 %v1688_v38  ;;  %1721 = vmatprep.subr.bf16.mxu1 %v1720_v55  ;;  %v1710_v19 = vpack.c.bf16 %v970_v17, %v969_v16  ;;  %v1001_v38 = vld [vmem:[#allocation11 + $0x170] sm:$0xff]  ;;  %v1002_v55 = vld [vmem:[#allocation11 + $0x178] sm:$0xff] }
 0x22a   :  { %v1742_v2 = vpack.c.bf16 %v1002_v55, %v1001_v38 }
 0x22c   :  { %1691 = vmatpush3.bf16.msra.mxu0 %v1690_v25  ;;  %1723 = vmatpush3.bf16.msra.mxu1 %v1722_v26  ;;  %v661_v25 = vsub.s32 3, %v648_v20  ;;  %v650_v26 = vrot.slane %v645_v23, %v649_v21 }
 0x22d   :  { %1693 = vmatprep.subr.bf16.mxu0 %v1692_v29  ;;  %1725 = vmatprep.subr.bf16.mxu1 %v1724_v30 }
 0x22e   :  { %v662_v29 = vrot.slane %v645_v23, %v661_v25 }
 0x230   :  { %1695 = vmatpush3.bf16.msra.mxu0 %v1694_v35  ;;  %1727 = vmatpush3.bf16.msra.mxu1 %v1726_v39 }
 0x231   :  { %1697 = vmatprep.subr.bf16.mxu0 %v1696_v43  ;;  %1729 = vmatprep.subr.bf16.mxu1 %v1728_v44 }
 0x234   :  { %1699 = vmatpush3.bf16.msra.mxu0 %v1698_v51  ;;  %1731 = vmatpush3.bf16.msra.mxu1 %v1730_v52 }
 0x235   :  { %1701 = vmatprep.subr.bf16.mxu0 %v1700_v56  ;;  %1733 = vmatprep.subr.bf16.mxu1 %v1732_v57 }
 0x238   :  { %1703 = vmatpush3.bf16.msra.mxu0 %v1702_v0  ;;  %1735 = vmatpush3.bf16.msra.mxu1 %v1734_v1 }
 0x239   :  { %1705 = vmatprep.subr.bf16.mxu0 %v1704_v3  ;;  %1737 = vmatprep.subr.bf16.mxu1 %v1736_v4 }
 0x23c   :  { %1707 = vmatpush3.bf16.msra.mxu0 %v1706_v8  ;;  %1739 = vmatpush3.bf16.msra.mxu1 %v1738_v10 }
 0x23d   :  { %1709 = vmatprep.subr.bf16.mxu0 %v1708_v14  ;;  %1741 = vmatprep.subr.bf16.mxu1 %v1740_v18 }
 0x240   :  { %1711 = vmatpush3.bf16.msra.mxu0 %v1710_v19  ;;  %1743 = vmatpush3.bf16.msra.mxu1 %v1742_v2 }
 0x2f6   :  { %v804_v30 = vpop.f32.mrb[2].mxu0  ;;  %v946_v31 = vpop.f32.mrb[2].mxu1 }
 0x2f7   :  { %v1744_v32 = vadd.f32 %v804_v30, %v650_v26  ;;  %v1746_v33 = vadd.f32 %v946_v31, %v658_v27  ;;  %v806_v34 = vpop.f32.mrb[3].mxu0  ;;  %v948_v36 = vpop.f32.mrb[3].mxu1 }
 0x2f8   :  { %v1745_v37 = vadd.f32 %v806_v34, %v654_v28  ;;  %v1747_v40 = vadd.f32 %v948_v36, %v662_v29 }
 0x2f9   :  { %v951_v41 = vmax.f32 %v1744_v32, 0.0  ;;  %v953_v42 = vmax.f32 %v1746_v33, 0.0 }
 0x2fa   :  { %v952_v35 = vmax.f32 %v1745_v37, 0.0  ;;  %v954_v39 = vmax.f32 %v1747_v40, 0.0 }
 0x2fc   :  { %1090 = vmatprep.mubr.f32.mxu0 %v952_v35  ;;  %1160 = vmatprep.mubr.f32.mxu1 %v954_v39 }
 0x2fd   :  { %1091 = vmatmul.mubr.f32.vlgmr.msra.gmra.mrb[4].mxu0 %v951_v41  ;;  %1161 = vmatmul.mubr.f32.vlgmr.msra.gmra.mrb[4].mxu1 %v953_v42 }
 0x3d0   :  { %v1268_v43 = vpop.f32.mrb[4].mxu0  ;;  %v1303_v44 = vpop.f32.mrb[4].mxu1 }
 0x3d1   :  { %v1269_v46 = vpop.f32.mrb[5].mxu0  ;;  %v1304_v47 = vpop.f32.mrb[5].mxu1 }
 0x3d2   :  { %v1270_v48 = vadd.f32 %v1269_v46, %v1268_v43  ;;  %v1305_v49 = vadd.f32 %v1304_v47, %v1303_v44 }
 0x3d4   :  { %v1093_v50 = vadd.f32 %v1270_v48, %v1201_v45 }
 0x3d6   :  { %v1163_v51 = vadd.f32 %v1305_v49, %v1093_v50 }
 0x3d8   :  { %1166 = vst [vmem:[#allocation12] sm:$0xff] %v1163_v51 }
 0x3d9   :  { %1912 = shalt.err (!%p1909_p2)
}
 0x3da   :  { %s1913_s6 = scalar_lea.hbm %s2163_s7, 128 }
 0x3db   :  { %p1914_p3 = scmp.ne.s32.totalorder %s2163_s7, %s1913_s6  ;;  %p1917_p4 = scmp.lt.u32.totalorder %s1913_s6, %s2163_s7 }
 0x3dd   :  { %p1919_p5 = pnand %p1917_p4, %p1914_p3 }
 0x3df   :  { %1922 = shalt.err (!%p1919_p5)
}
 0x3e0   :  { %1176 = dma.vmem_to_hbm [thread:$0]  %s1174_s16, 128, %s2163_s7, [#allocation5]  }
 0x3e1   :  { %1929 = dma.done.wait [#allocation5], 128  }
 0x3e2   :  { %1930 = vsyncadd [#allocation5], 4294967168 }
 0x3e3   :  { %1180 = vsyncpa [#allocation4], 1 }
 0x3e4   :  { %1181 = vsyncpa [#allocation7], 1 }
 0x3e5   :  { %1182 = vsyncpa [#allocation10], 1 }
 0x3e6   :  { %1183 = vsyncpa [#allocation5], 1 }

</bundles_post_ra>
